<compile_context>
chip_gen: v7x
topology: tpu7x:2x2x1
jax: 0.10.0
libtpu: 0.0.40
codegen_flags: <defaults>
</compile_context>

<pallas_src>
import jax
import jax.numpy as jnp
from jax import lax
from jax.experimental import pallas as pl
from jax.experimental.pallas import tpu as pltpu


# --------------------------------------------------------------------------
# Fused kernel factory.  Row convention for flattened sequences: row = t*B + b
# (time-major), so a timestep is one contiguous (B, 4H) slice.
# --------------------------------------------------------------------------
def _make_fused_kernel(n_layers, T, B):
    def kernel(*refs):
        x_ref = refs[0]                                   # (T*B, D) bf16, time-major
        layer_refs = [refs[1 + 3 * l: 4 + 3 * l] for l in range(n_layers)]
        dw_ref = refs[1 + 3 * n_layers]                   # (H, V) bf16, pre-transposed
        db_ref = refs[2 + 3 * n_layers]                   # (1, V) f32
        out_ref = refs[3 + 3 * n_layers]                  # (T*B, V) f32

        H = layer_refs[0][1].shape[0]

        wih = [layer_refs[l][0][...] for l in range(n_layers)]   # (D|H, 4H) bf16
        whh = [layer_refs[l][1][...] for l in range(n_layers)]   # (H, 4H)   bf16
        bias = [layer_refs[l][2][...] for l in range(n_layers)]  # (1, 4H)   f32

        # Layer 0: input projection for ALL timesteps in one MXU op, bias folded.
        xg0_all = (jnp.dot(x_ref[...], wih[0],
                           preferred_element_type=jnp.float32)
                   + bias[0])                                    # (T*B, 4H) f32

        def lstm_step(xg, h_prev, c_prev, whh_l):
            # TODO(synk): keep whh_l resident in the MXU across timesteps via
            # pltpu.matmul_push_rhs / matmul_acc_lhs / matmul_pop once bundle
            # dumps confirm the compiler re-pushes the (H,4H) RHS every step.
            gates = xg + jnp.dot(h_prev.astype(jnp.bfloat16), whh_l,
                                 preferred_element_type=jnp.float32)
            sig = jax.nn.sigmoid(gates)     # one full-width EUP pass (i,f,o)
            tnh = jnp.tanh(gates)           # one full-width EUP pass (g)
            i_g = sig[:, 0 * H:1 * H]
            f_g = sig[:, 1 * H:2 * H]
            g_g = tnh[:, 2 * H:3 * H]
            o_g = sig[:, 3 * H:4 * H]
            c_new = f_g * c_prev + i_g * g_g
            h_new = o_g * jnp.tanh(c_new)
            return h_new, c_new

        h = [jnp.zeros((B, H), jnp.float32) for _ in range(n_layers)]
        c = [jnp.zeros((B, H), jnp.float32) for _ in range(n_layers)]
        hist = [[None] * T for _ in range(n_layers)]

        # Wavefront over the layer stack: wave s runs layer l at timestep
        # t = s - l.  Layer-l step t and layer-(l+1) step t-1 have no data
        # dependency, so their chains overlap.  Fully unrolled: T, B, L are
        # small and static.
        # TODO(synk): for large T, chunk the time axis over a grid dimension
        # (pl.Buffered(2) input spec) to bound the (T*B,4H) staging buffer on
        # v7x's 64 MiB VMEM; for large B on v7x add a leading "parallel"
        # batch-chunk grid axis so the second TensorCore is not idle.
        for s in range(T + n_layers - 1):
            for l in range(n_layers):
                t = s - l
                if not (0 <= t < T):
                    continue
                if l == 0:
                    xg = xg0_all[t * B:(t + 1) * B, :]           # contiguous rows
                else:
                    # Off the recurrence critical path: consumes layer l-1's
                    # step-t output produced in the previous wave.
                    xg = (jnp.dot(hist[l - 1][t].astype(jnp.bfloat16), wih[l],
                                  preferred_element_type=jnp.float32)
                          + bias[l])
                h[l], c[l] = lstm_step(xg, h[l], c[l], whh[l])
                hist[l][t] = h[l]

        # Assemble last layer's sequence from registers once, then decode +
        # log-softmax over all (T*B) rows in one shot.
        h_seq = jnp.concatenate(hist[n_layers - 1], axis=0)       # (T*B, H) f32
        logits = (jnp.dot(h_seq.astype(jnp.bfloat16), dw_ref[...],
                          preferred_element_type=jnp.float32)
                  + db_ref[...])                                  # (T*B, V) f32
        m = jnp.max(logits, axis=-1, keepdims=True)
        sft = logits - m
        lse = jnp.log(jnp.sum(jnp.exp(sft), axis=-1, keepdims=True))
        # TODO(synk): pad V to a multiple of 128 (decoder + output) once the
        # vocab grows so the writeback uses unmasked vst; negligible at V=32.
        out_ref[...] = (sft - lse).astype(out_ref.dtype)

    return kernel


# --------------------------------------------------------------------------
# Wrapper: single pallas_call; time-major reshapes done by XLA outside.
# --------------------------------------------------------------------------
def char_predictor_pallas(inpt, layer_params, dec_wt, dec_bt):
    B, T, D = inpt.shape
    n_layers = len(layer_params)
    V = dec_wt.shape[1]

    # (B,T,D) -> (T*B,D) time-major, cast MXU operand to bf16 — once, in XLA.
    x_tm = jnp.transpose(inpt, (1, 0, 2)).reshape(T * B, D).astype(jnp.bfloat16)

    flat_inputs = [x_tm]
    in_specs = [pl.BlockSpec((T * B, D), lambda i: (0, 0))]
    for (wih_t, whh_t, b2) in layer_params:
        flat_inputs += [wih_t, whh_t, b2]
        in_specs += [
            pl.BlockSpec(wih_t.shape, lambda i: (0, 0)),
            pl.BlockSpec(whh_t.shape, lambda i: (0, 0)),
            pl.BlockSpec(b2.shape, lambda i: (0, 0)),
        ]
    flat_inputs += [dec_wt, dec_bt]
    in_specs += [pl.BlockSpec(dec_wt.shape, lambda i: (0, 0)),
                 pl.BlockSpec(dec_bt.shape, lambda i: (0, 0))]

    out_flat = pl.pallas_call(
        _make_fused_kernel(n_layers, T, B),
        out_shape=jax.ShapeDtypeStruct((T * B, V), jnp.float32),
        grid_spec=pltpu.PrefetchScalarGridSpec(
            num_scalar_prefetch=0,
            grid=(1,),
            in_specs=in_specs,
            out_specs=pl.BlockSpec((T * B, V), lambda i: (0, 0)),
        ),
        compiler_params=pltpu.CompilerParams(
            dimension_semantics=("arbitrary",)),
    )(*flat_inputs)

    # (T*B,V) -> (B,T,V) outside the kernel.
    return jnp.transpose(out_flat.reshape(T, B, V), (1, 0, 2))


@jax.jit
def char_predictor_forward(inpt, prepared):
    layer_params, dec_wt, dec_bt = prepared
    return char_predictor_pallas(inpt, layer_params, dec_wt, dec_bt)


def prepare_params(lstm_params, dec_w, dec_b):
    """PyTorch layout -> kernel layout: pre-transpose weights once (outside the
    kernel), cast matmul operands to bf16, fuse biases, keep biases 2D f32 for
    lane-dense broadcasting."""
    layers = tuple(
        (jnp.transpose(w_ih).astype(jnp.bfloat16),
         jnp.transpose(w_hh).astype(jnp.bfloat16),
         b.reshape(1, -1).astype(jnp.float32))
        for (w_ih, w_hh, b) in lstm_params)
    return (layers,
            jnp.transpose(dec_w).astype(jnp.bfloat16),
            dec_b.reshape(1, -1).astype(jnp.float32))


# --------------------------------------------------------------------------
# Pure-JAX f32 reference (PyTorch-layout params) for correctness check.
# --------------------------------------------------------------------------
def ref_forward(inpt, lstm_params, dec_w, dec_b):
    B = inpt.shape[0]
    h_seq = jnp.transpose(inpt, (1, 0, 2))
    for (w_ih, w_hh, b) in lstm_params:
        H = w_hh.shape[1]

        def step(carry, xt):
            h, c = carry
            gates = xt @ w_ih.T + h @ w_hh.T + b[0]
            i = jax.nn.sigmoid(gates[:, :H])
            f = jax.nn.sigmoid(gates[:, H:2 * H])
            g = jnp.tanh(gates[:, 2 * H:3 * H])
            o = jax.nn.sigmoid(gates[:, 3 * H:])
            c = f * c + i * g
            h = o * jnp.tanh(c)
            return (h, c), h

        init = (jnp.zeros((B, H), jnp.float32), jnp.zeros((B, H), jnp.float32))
        _, h_seq = lax.scan(step, init, h_seq)
    logits = h_seq @ dec_w.T + dec_b
    out = jax.nn.log_softmax(logits, axis=-1)
    return jnp.transpose(out, (1, 0, 2))


# --------------------------------------------------------------------------
# Deterministic PyTorch-style parameter init: uniform(-1/sqrt(H), 1/sqrt(H)).
# --------------------------------------------------------------------------
def init_params(key, vocab_size, n_hidden, n_layers):
    D_in = vocab_size + 1
    bound = 1.0 / jnp.sqrt(jnp.float32(n_hidden))
    lstm_params = []
    for layer in range(n_layers):
        d = D_in if layer == 0 else n_hidden
        key, k1, k2, k3, k4 = jax.random.split(key, 5)
        w_ih = jax.random.uniform(k1, (4 * n_hidden, d), jnp.float32, -bound, bound)
        w_hh = jax.random.uniform(k2, (4 * n_hidden, n_hidden), jnp.float32, -bound, bound)
        b_ih = jax.random.uniform(k3, (4 * n_hidden,), jnp.float32, -bound, bound)
        b_hh = jax.random.uniform(k4, (4 * n_hidden,), jnp.float32, -bound, bound)
        lstm_params.append((w_ih, w_hh, (b_ih + b_hh).reshape(1, 4 * n_hidden)))
    key, k5, k6 = jax.random.split(key, 3)
    dec_w = jax.random.uniform(k5, (D_in, n_hidden), jnp.float32, -bound, bound)
    dec_b = jax.random.uniform(k6, (D_in,), jnp.float32, -bound, bound)
    return lstm_params, dec_w, dec_b


if __name__ == "__main__":
    vocab_size = 31          # -> input/output feature size 32
    lstm_n_hidden = 32       # -> 4H = 128 lanes (lane-dense gates)
    lstm_n_layers = 2
    batch = 2
    seq = 8

    key = jax.random.PRNGKey(0)
    key, pkey, xkey = jax.random.split(key, 3)
    lstm_params, dec_w, dec_b = init_params(pkey, vocab_size, lstm_n_hidden,
                                            lstm_n_layers)
    prepared = prepare_params(lstm_params, dec_w, dec_b)

    # Input shaped like the char model: (B, T, vocab_size+1), batch_first.
    inpt = jax.random.normal(xkey, (batch, seq, vocab_size + 1), jnp.float32)

    out = char_predictor_forward(inpt, prepared)
    out = jax.block_until_ready(out)

    ref = jax.block_until_ready(ref_forward(inpt, lstm_params, dec_w, dec_b))

    assert out.shape == (batch, seq, vocab_size + 1), out.shape
    # Tolerance loosened slightly (per review) for bf16 MXU operands; f32
    # accumulation + f32 elementwise math keep the error well inside this.
    assert jnp.allclose(out, ref, atol=3e-2, rtol=3e-2), (
        f"max abs err {jnp.max(jnp.abs(out - ref))}")

    print("KERNEL_OK")
</pallas_src>

<mosaic_0001>
module attributes {stable_mosaic.version = 11 : i64} {
  func.func @kernel(%arg0: i32, %arg1: memref<16x32xbf16, #tpu.memory_space<vmem>>, %arg2: memref<32x128xbf16, #tpu.memory_space<vmem>>, %arg3: memref<32x128xbf16, #tpu.memory_space<vmem>>, %arg4: memref<1x128xf32, #tpu.memory_space<vmem>>, %arg5: memref<32x128xbf16, #tpu.memory_space<vmem>>, %arg6: memref<32x128xbf16, #tpu.memory_space<vmem>>, %arg7: memref<1x128xf32, #tpu.memory_space<vmem>>, %arg8: memref<32x32xbf16, #tpu.memory_space<vmem>>, %arg9: memref<1x32xf32, #tpu.memory_space<vmem>>, %arg10: memref<16x32xf32, #tpu.memory_space<vmem>>) attributes {dimension_semantics = [#tpu.dimension_semantics<arbitrary>], iteration_bounds = array<i64: 1>, scalar_prefetch = 0 : i64, scratch_operands = 0 : i64, tpu.core_type = #tpu.core_type<tc>, window_params = [{pipeline_mode = #tpu.pipeline_mode<synchronous>, transform_indices = @transform_0, window_bounds = array<i64: 16, 32>}, {pipeline_mode = #tpu.pipeline_mode<synchronous>, transform_indices = @transform_1, window_bounds = array<i64: 32, 128>}, {pipeline_mode = #tpu.pipeline_mode<synchronous>, transform_indices = @transform_2, window_bounds = array<i64: 32, 128>}, {pipeline_mode = #tpu.pipeline_mode<synchronous>, transform_indices = @transform_3, window_bounds = array<i64: 1, 128>}, {pipeline_mode = #tpu.pipeline_mode<synchronous>, transform_indices = @transform_4, window_bounds = array<i64: 32, 128>}, {pipeline_mode = #tpu.pipeline_mode<synchronous>, transform_indices = @transform_5, window_bounds = array<i64: 32, 128>}, {pipeline_mode = #tpu.pipeline_mode<synchronous>, transform_indices = @transform_6, window_bounds = array<i64: 1, 128>}, {pipeline_mode = #tpu.pipeline_mode<synchronous>, transform_indices = @transform_7, window_bounds = array<i64: 32, 32>}, {pipeline_mode = #tpu.pipeline_mode<synchronous>, transform_indices = @transform_8, window_bounds = array<i64: 1, 32>}, {pipeline_mode = #tpu.pipeline_mode<synchronous>, transform_indices = @transform_9, window_bounds = array<i64: 16, 32>}]} {
    %c0 = arith.constant 0 : index
    %c0_0 = arith.constant 0 : index
    %0 = vector.load %arg2[%c0, %c0_0] : memref<32x128xbf16, #tpu.memory_space<vmem>>, vector<32x128xbf16>
    %c0_1 = arith.constant 0 : index
    %c0_2 = arith.constant 0 : index
    %1 = vector.load %arg5[%c0_1, %c0_2] : memref<32x128xbf16, #tpu.memory_space<vmem>>, vector<32x128xbf16>
    %c0_3 = arith.constant 0 : index
    %c0_4 = arith.constant 0 : index
    %2 = vector.load %arg3[%c0_3, %c0_4] : memref<32x128xbf16, #tpu.memory_space<vmem>>, vector<32x128xbf16>
    %c0_5 = arith.constant 0 : index
    %c0_6 = arith.constant 0 : index
    %3 = vector.load %arg6[%c0_5, %c0_6] : memref<32x128xbf16, #tpu.memory_space<vmem>>, vector<32x128xbf16>
    %c0_7 = arith.constant 0 : index
    %c0_8 = arith.constant 0 : index
    %4 = vector.load %arg4[%c0_7, %c0_8] : memref<1x128xf32, #tpu.memory_space<vmem>>, vector<1x128xf32>
    %c0_9 = arith.constant 0 : index
    %c0_10 = arith.constant 0 : index
    %5 = vector.load %arg7[%c0_9, %c0_10] : memref<1x128xf32, #tpu.memory_space<vmem>>, vector<1x128xf32>
    %c0_11 = arith.constant 0 : index
    %c0_12 = arith.constant 0 : index
    %6 = vector.load %arg1[%c0_11, %c0_12] : memref<16x32xbf16, #tpu.memory_space<vmem>>, vector<16x32xbf16>
    %cst = arith.constant dense<0.000000e+00> : vector<16x128xf32>
    %7 = tpu.matmul %6, %0, %cst {dimension_numbers = #tpu.dot_dimension_numbers<[1], [0], [0], [1], [0, 0, 1, 1], [], []>} : vector<16x32xbf16>, vector<32x128xbf16>, vector<16x128xf32> -> vector<16x128xf32>
    %8 = vector.broadcast %4 : vector<1x128xf32> to vector<16x128xf32>
    %9 = arith.addf %7, %8 : vector<16x128xf32>
    %cst_13 = arith.constant 0.000000e+00 : f32
    %10 = vector.broadcast %cst_13 : f32 to vector<2x32xf32>
    %cst_14 = arith.constant 0.000000e+00 : f32
    %11 = vector.broadcast %cst_14 : f32 to vector<2x32xf32>
    %cst_15 = arith.constant 0.000000e+00 : f32
    %12 = vector.broadcast %cst_15 : f32 to vector<2x32xf32>
    %cst_16 = arith.constant 0.000000e+00 : f32
    %13 = vector.broadcast %cst_16 : f32 to vector<2x32xf32>
    %14 = vector.extract_strided_slice %9 {offsets = [0, 0], sizes = [2, 128], strides = [1, 1]} : vector<16x128xf32> to vector<2x128xf32>
    %15 = arith.truncf %10 : vector<2x32xf32> to vector<2x32xbf16>
    %cst_17 = arith.constant dense<0.000000e+00> : vector<2x128xf32>
    %16 = tpu.matmul %15, %2, %cst_17 {dimension_numbers = #tpu.dot_dimension_numbers<[1], [0], [0], [1], [0, 0, 1, 1], [], []>} : vector<2x32xbf16>, vector<32x128xbf16>, vector<2x128xf32> -> vector<2x128xf32>
    %17 = arith.addf %14, %16 : vector<2x128xf32>
    %18 = arith.negf %17 : vector<2x128xf32>
    %19 = math.exp %18 : vector<2x128xf32>
    %cst_18 = arith.constant 1.000000e+00 : f32
    %20 = vector.broadcast %cst_18 : f32 to vector<2x128xf32>
    %21 = arith.addf %20, %19 : vector<2x128xf32>
    %22 = arith.divf %20, %21 : vector<2x128xf32>
    %23 = math.tanh %17 : vector<2x128xf32>
    %24 = vector.extract_strided_slice %22 {offsets = [0, 0], sizes = [2, 32], strides = [1, 1]} : vector<2x128xf32> to vector<2x32xf32>
    %25 = vector.extract_strided_slice %22 {offsets = [0, 32], sizes = [2, 32], strides = [1, 1]} : vector<2x128xf32> to vector<2x32xf32>
    %26 = vector.extract_strided_slice %23 {offsets = [0, 64], sizes = [2, 32], strides = [1, 1]} : vector<2x128xf32> to vector<2x32xf32>
    %27 = vector.extract_strided_slice %22 {offsets = [0, 96], sizes = [2, 32], strides = [1, 1]} : vector<2x128xf32> to vector<2x32xf32>
    %28 = arith.mulf %25, %12 : vector<2x32xf32>
    %29 = arith.mulf %24, %26 : vector<2x32xf32>
    %30 = arith.addf %28, %29 : vector<2x32xf32>
    %31 = math.tanh %30 : vector<2x32xf32>
    %32 = arith.mulf %27, %31 : vector<2x32xf32>
    %33 = vector.extract_strided_slice %9 {offsets = [2, 0], sizes = [2, 128], strides = [1, 1]} : vector<16x128xf32> to vector<2x128xf32>
    %34 = arith.truncf %32 : vector<2x32xf32> to vector<2x32xbf16>
    %cst_19 = arith.constant dense<0.000000e+00> : vector<2x128xf32>
    %35 = tpu.matmul %34, %2, %cst_19 {dimension_numbers = #tpu.dot_dimension_numbers<[1], [0], [0], [1], [0, 0, 1, 1], [], []>} : vector<2x32xbf16>, vector<32x128xbf16>, vector<2x128xf32> -> vector<2x128xf32>
    %36 = arith.addf %33, %35 : vector<2x128xf32>
    %37 = arith.negf %36 : vector<2x128xf32>
    %38 = math.exp %37 : vector<2x128xf32>
    %cst_20 = arith.constant 1.000000e+00 : f32
    %39 = vector.broadcast %cst_20 : f32 to vector<2x128xf32>
    %40 = arith.addf %39, %38 : vector<2x128xf32>
    %41 = arith.divf %39, %40 : vector<2x128xf32>
    %42 = math.tanh %36 : vector<2x128xf32>
    %43 = vector.extract_strided_slice %41 {offsets = [0, 0], sizes = [2, 32], strides = [1, 1]} : vector<2x128xf32> to vector<2x32xf32>
    %44 = vector.extract_strided_slice %41 {offsets = [0, 32], sizes = [2, 32], strides = [1, 1]} : vector<2x128xf32> to vector<2x32xf32>
    %45 = vector.extract_strided_slice %42 {offsets = [0, 64], sizes = [2, 32], strides = [1, 1]} : vector<2x128xf32> to vector<2x32xf32>
    %46 = vector.extract_strided_slice %41 {offsets = [0, 96], sizes = [2, 32], strides = [1, 1]} : vector<2x128xf32> to vector<2x32xf32>
    %47 = arith.mulf %44, %30 : vector<2x32xf32>
    %48 = arith.mulf %43, %45 : vector<2x32xf32>
    %49 = arith.addf %47, %48 : vector<2x32xf32>
    %50 = math.tanh %49 : vector<2x32xf32>
    %51 = arith.mulf %46, %50 : vector<2x32xf32>
    %52 = arith.truncf %32 : vector<2x32xf32> to vector<2x32xbf16>
    %cst_21 = arith.constant dense<0.000000e+00> : vector<2x128xf32>
    %53 = tpu.matmul %52, %1, %cst_21 {dimension_numbers = #tpu.dot_dimension_numbers<[1], [0], [0], [1], [0, 0, 1, 1], [], []>} : vector<2x32xbf16>, vector<32x128xbf16>, vector<2x128xf32> -> vector<2x128xf32>
    %54 = vector.broadcast %5 : vector<1x128xf32> to vector<2x128xf32>
    %55 = arith.addf %53, %54 : vector<2x128xf32>
    %56 = arith.truncf %11 : vector<2x32xf32> to vector<2x32xbf16>
    %cst_22 = arith.constant dense<0.000000e+00> : vector<2x128xf32>
    %57 = tpu.matmul %56, %3, %cst_22 {dimension_numbers = #tpu.dot_dimension_numbers<[1], [0], [0], [1], [0, 0, 1, 1], [], []>} : vector<2x32xbf16>, vector<32x128xbf16>, vector<2x128xf32> -> vector<2x128xf32>
    %58 = arith.addf %55, %57 : vector<2x128xf32>
    %59 = arith.negf %58 : vector<2x128xf32>
    %60 = math.exp %59 : vector<2x128xf32>
    %cst_23 = arith.constant 1.000000e+00 : f32
    %61 = vector.broadcast %cst_23 : f32 to vector<2x128xf32>
    %62 = arith.addf %61, %60 : vector<2x128xf32>
    %63 = arith.divf %61, %62 : vector<2x128xf32>
    %64 = math.tanh %58 : vector<2x128xf32>
    %65 = vector.extract_strided_slice %63 {offsets = [0, 0], sizes = [2, 32], strides = [1, 1]} : vector<2x128xf32> to vector<2x32xf32>
    %66 = vector.extract_strided_slice %63 {offsets = [0, 32], sizes = [2, 32], strides = [1, 1]} : vector<2x128xf32> to vector<2x32xf32>
    %67 = vector.extract_strided_slice %64 {offsets = [0, 64], sizes = [2, 32], strides = [1, 1]} : vector<2x128xf32> to vector<2x32xf32>
    %68 = vector.extract_strided_slice %63 {offsets = [0, 96], sizes = [2, 32], strides = [1, 1]} : vector<2x128xf32> to vector<2x32xf32>
    %69 = arith.mulf %66, %13 : vector<2x32xf32>
    %70 = arith.mulf %65, %67 : vector<2x32xf32>
    %71 = arith.addf %69, %70 : vector<2x32xf32>
    %72 = math.tanh %71 : vector<2x32xf32>
    %73 = arith.mulf %68, %72 : vector<2x32xf32>
    %74 = vector.extract_strided_slice %9 {offsets = [4, 0], sizes = [2, 128], strides = [1, 1]} : vector<16x128xf32> to vector<2x128xf32>
    %75 = arith.truncf %51 : vector<2x32xf32> to vector<2x32xbf16>
    %cst_24 = arith.constant dense<0.000000e+00> : vector<2x128xf32>
    %76 = tpu.matmul %75, %2, %cst_24 {dimension_numbers = #tpu.dot_dimension_numbers<[1], [0], [0], [1], [0, 0, 1, 1], [], []>} : vector<2x32xbf16>, vector<32x128xbf16>, vector<2x128xf32> -> vector<2x128xf32>
    %77 = arith.addf %74, %76 : vector<2x128xf32>
    %78 = arith.negf %77 : vector<2x128xf32>
    %79 = math.exp %78 : vector<2x128xf32>
    %cst_25 = arith.constant 1.000000e+00 : f32
    %80 = vector.broadcast %cst_25 : f32 to vector<2x128xf32>
    %81 = arith.addf %80, %79 : vector<2x128xf32>
    %82 = arith.divf %80, %81 : vector<2x128xf32>
    %83 = math.tanh %77 : vector<2x128xf32>
    %84 = vector.extract_strided_slice %82 {offsets = [0, 0], sizes = [2, 32], strides = [1, 1]} : vector<2x128xf32> to vector<2x32xf32>
    %85 = vector.extract_strided_slice %82 {offsets = [0, 32], sizes = [2, 32], strides = [1, 1]} : vector<2x128xf32> to vector<2x32xf32>
    %86 = vector.extract_strided_slice %83 {offsets = [0, 64], sizes = [2, 32], strides = [1, 1]} : vector<2x128xf32> to vector<2x32xf32>
    %87 = vector.extract_strided_slice %82 {offsets = [0, 96], sizes = [2, 32], strides = [1, 1]} : vector<2x128xf32> to vector<2x32xf32>
    %88 = arith.mulf %85, %49 : vector<2x32xf32>
    %89 = arith.mulf %84, %86 : vector<2x32xf32>
    %90 = arith.addf %88, %89 : vector<2x32xf32>
    %91 = math.tanh %90 : vector<2x32xf32>
    %92 = arith.mulf %87, %91 : vector<2x32xf32>
    %93 = arith.truncf %51 : vector<2x32xf32> to vector<2x32xbf16>
    %cst_26 = arith.constant dense<0.000000e+00> : vector<2x128xf32>
    %94 = tpu.matmul %93, %1, %cst_26 {dimension_numbers = #tpu.dot_dimension_numbers<[1], [0], [0], [1], [0, 0, 1, 1], [], []>} : vector<2x32xbf16>, vector<32x128xbf16>, vector<2x128xf32> -> vector<2x128xf32>
    %95 = vector.broadcast %5 : vector<1x128xf32> to vector<2x128xf32>
    %96 = arith.addf %94, %95 : vector<2x128xf32>
    %97 = arith.truncf %73 : vector<2x32xf32> to vector<2x32xbf16>
    %cst_27 = arith.constant dense<0.000000e+00> : vector<2x128xf32>
    %98 = tpu.matmul %97, %3, %cst_27 {dimension_numbers = #tpu.dot_dimension_numbers<[1], [0], [0], [1], [0, 0, 1, 1], [], []>} : vector<2x32xbf16>, vector<32x128xbf16>, vector<2x128xf32> -> vector<2x128xf32>
    %99 = arith.addf %96, %98 : vector<2x128xf32>
    %100 = arith.negf %99 : vector<2x128xf32>
    %101 = math.exp %100 : vector<2x128xf32>
    %cst_28 = arith.constant 1.000000e+00 : f32
    %102 = vector.broadcast %cst_28 : f32 to vector<2x128xf32>
    %103 = arith.addf %102, %101 : vector<2x128xf32>
    %104 = arith.divf %102, %103 : vector<2x128xf32>
    %105 = math.tanh %99 : vector<2x128xf32>
    %106 = vector.extract_strided_slice %104 {offsets = [0, 0], sizes = [2, 32], strides = [1, 1]} : vector<2x128xf32> to vector<2x32xf32>
    %107 = vector.extract_strided_slice %104 {offsets = [0, 32], sizes = [2, 32], strides = [1, 1]} : vector<2x128xf32> to vector<2x32xf32>
    %108 = vector.extract_strided_slice %105 {offsets = [0, 64], sizes = [2, 32], strides = [1, 1]} : vector<2x128xf32> to vector<2x32xf32>
    %109 = vector.extract_strided_slice %104 {offsets = [0, 96], sizes = [2, 32], strides = [1, 1]} : vector<2x128xf32> to vector<2x32xf32>
    %110 = arith.mulf %107, %71 : vector<2x32xf32>
    %111 = arith.mulf %106, %108 : vector<2x32xf32>
    %112 = arith.addf %110, %111 : vector<2x32xf32>
    %113 = math.tanh %112 : vector<2x32xf32>
    %114 = arith.mulf %109, %113 : vector<2x32xf32>
    %115 = vector.extract_strided_slice %9 {offsets = [6, 0], sizes = [2, 128], strides = [1, 1]} : vector<16x128xf32> to vector<2x128xf32>
    %116 = arith.truncf %92 : vector<2x32xf32> to vector<2x32xbf16>
    %cst_29 = arith.constant dense<0.000000e+00> : vector<2x128xf32>
    %117 = tpu.matmul %116, %2, %cst_29 {dimension_numbers = #tpu.dot_dimension_numbers<[1], [0], [0], [1], [0, 0, 1, 1], [], []>} : vector<2x32xbf16>, vector<32x128xbf16>, vector<2x128xf32> -> vector<2x128xf32>
    %118 = arith.addf %115, %117 : vector<2x128xf32>
    %119 = arith.negf %118 : vector<2x128xf32>
    %120 = math.exp %119 : vector<2x128xf32>
    %cst_30 = arith.constant 1.000000e+00 : f32
    %121 = vector.broadcast %cst_30 : f32 to vector<2x128xf32>
    %122 = arith.addf %121, %120 : vector<2x128xf32>
    %123 = arith.divf %121, %122 : vector<2x128xf32>
    %124 = math.tanh %118 : vector<2x128xf32>
    %125 = vector.extract_strided_slice %123 {offsets = [0, 0], sizes = [2, 32], strides = [1, 1]} : vector<2x128xf32> to vector<2x32xf32>
    %126 = vector.extract_strided_slice %123 {offsets = [0, 32], sizes = [2, 32], strides = [1, 1]} : vector<2x128xf32> to vector<2x32xf32>
    %127 = vector.extract_strided_slice %124 {offsets = [0, 64], sizes = [2, 32], strides = [1, 1]} : vector<2x128xf32> to vector<2x32xf32>
    %128 = vector.extract_strided_slice %123 {offsets = [0, 96], sizes = [2, 32], strides = [1, 1]} : vector<2x128xf32> to vector<2x32xf32>
    %129 = arith.mulf %126, %90 : vector<2x32xf32>
    %130 = arith.mulf %125, %127 : vector<2x32xf32>
    %131 = arith.addf %129, %130 : vector<2x32xf32>
    %132 = math.tanh %131 : vector<2x32xf32>
    %133 = arith.mulf %128, %132 : vector<2x32xf32>
    %134 = arith.truncf %92 : vector<2x32xf32> to vector<2x32xbf16>
    %cst_31 = arith.constant dense<0.000000e+00> : vector<2x128xf32>
    %135 = tpu.matmul %134, %1, %cst_31 {dimension_numbers = #tpu.dot_dimension_numbers<[1], [0], [0], [1], [0, 0, 1, 1], [], []>} : vector<2x32xbf16>, vector<32x128xbf16>, vector<2x128xf32> -> vector<2x128xf32>
    %136 = vector.broadcast %5 : vector<1x128xf32> to vector<2x128xf32>
    %137 = arith.addf %135, %136 : vector<2x128xf32>
    %138 = arith.truncf %114 : vector<2x32xf32> to vector<2x32xbf16>
    %cst_32 = arith.constant dense<0.000000e+00> : vector<2x128xf32>
    %139 = tpu.matmul %138, %3, %cst_32 {dimension_numbers = #tpu.dot_dimension_numbers<[1], [0], [0], [1], [0, 0, 1, 1], [], []>} : vector<2x32xbf16>, vector<32x128xbf16>, vector<2x128xf32> -> vector<2x128xf32>
    %140 = arith.addf %137, %139 : vector<2x128xf32>
    %141 = arith.negf %140 : vector<2x128xf32>
    %142 = math.exp %141 : vector<2x128xf32>
    %cst_33 = arith.constant 1.000000e+00 : f32
    %143 = vector.broadcast %cst_33 : f32 to vector<2x128xf32>
    %144 = arith.addf %143, %142 : vector<2x128xf32>
    %145 = arith.divf %143, %144 : vector<2x128xf32>
    %146 = math.tanh %140 : vector<2x128xf32>
    %147 = vector.extract_strided_slice %145 {offsets = [0, 0], sizes = [2, 32], strides = [1, 1]} : vector<2x128xf32> to vector<2x32xf32>
    %148 = vector.extract_strided_slice %145 {offsets = [0, 32], sizes = [2, 32], strides = [1, 1]} : vector<2x128xf32> to vector<2x32xf32>
    %149 = vector.extract_strided_slice %146 {offsets = [0, 64], sizes = [2, 32], strides = [1, 1]} : vector<2x128xf32> to vector<2x32xf32>
    %150 = vector.extract_strided_slice %145 {offsets = [0, 96], sizes = [2, 32], strides = [1, 1]} : vector<2x128xf32> to vector<2x32xf32>
    %151 = arith.mulf %148, %112 : vector<2x32xf32>
    %152 = arith.mulf %147, %149 : vector<2x32xf32>
    %153 = arith.addf %151, %152 : vector<2x32xf32>
    %154 = math.tanh %153 : vector<2x32xf32>
    %155 = arith.mulf %150, %154 : vector<2x32xf32>
    %156 = vector.extract_strided_slice %9 {offsets = [8, 0], sizes = [2, 128], strides = [1, 1]} : vector<16x128xf32> to vector<2x128xf32>
    %157 = arith.truncf %133 : vector<2x32xf32> to vector<2x32xbf16>
    %cst_34 = arith.constant dense<0.000000e+00> : vector<2x128xf32>
    %158 = tpu.matmul %157, %2, %cst_34 {dimension_numbers = #tpu.dot_dimension_numbers<[1], [0], [0], [1], [0, 0, 1, 1], [], []>} : vector<2x32xbf16>, vector<32x128xbf16>, vector<2x128xf32> -> vector<2x128xf32>
    %159 = arith.addf %156, %158 : vector<2x128xf32>
    %160 = arith.negf %159 : vector<2x128xf32>
    %161 = math.exp %160 : vector<2x128xf32>
    %cst_35 = arith.constant 1.000000e+00 : f32
    %162 = vector.broadcast %cst_35 : f32 to vector<2x128xf32>
    %163 = arith.addf %162, %161 : vector<2x128xf32>
    %164 = arith.divf %162, %163 : vector<2x128xf32>
    %165 = math.tanh %159 : vector<2x128xf32>
    %166 = vector.extract_strided_slice %164 {offsets = [0, 0], sizes = [2, 32], strides = [1, 1]} : vector<2x128xf32> to vector<2x32xf32>
    %167 = vector.extract_strided_slice %164 {offsets = [0, 32], sizes = [2, 32], strides = [1, 1]} : vector<2x128xf32> to vector<2x32xf32>
    %168 = vector.extract_strided_slice %165 {offsets = [0, 64], sizes = [2, 32], strides = [1, 1]} : vector<2x128xf32> to vector<2x32xf32>
    %169 = vector.extract_strided_slice %164 {offsets = [0, 96], sizes = [2, 32], strides = [1, 1]} : vector<2x128xf32> to vector<2x32xf32>
    %170 = arith.mulf %167, %131 : vector<2x32xf32>
    %171 = arith.mulf %166, %168 : vector<2x32xf32>
    %172 = arith.addf %170, %171 : vector<2x32xf32>
    %173 = math.tanh %172 : vector<2x32xf32>
    %174 = arith.mulf %169, %173 : vector<2x32xf32>
    %175 = arith.truncf %133 : vector<2x32xf32> to vector<2x32xbf16>
    %cst_36 = arith.constant dense<0.000000e+00> : vector<2x128xf32>
    %176 = tpu.matmul %175, %1, %cst_36 {dimension_numbers = #tpu.dot_dimension_numbers<[1], [0], [0], [1], [0, 0, 1, 1], [], []>} : vector<2x32xbf16>, vector<32x128xbf16>, vector<2x128xf32> -> vector<2x128xf32>
    %177 = vector.broadcast %5 : vector<1x128xf32> to vector<2x128xf32>
    %178 = arith.addf %176, %177 : vector<2x128xf32>
    %179 = arith.truncf %155 : vector<2x32xf32> to vector<2x32xbf16>
    %cst_37 = arith.constant dense<0.000000e+00> : vector<2x128xf32>
    %180 = tpu.matmul %179, %3, %cst_37 {dimension_numbers = #tpu.dot_dimension_numbers<[1], [0], [0], [1], [0, 0, 1, 1], [], []>} : vector<2x32xbf16>, vector<32x128xbf16>, vector<2x128xf32> -> vector<2x128xf32>
    %181 = arith.addf %178, %180 : vector<2x128xf32>
    %182 = arith.negf %181 : vector<2x128xf32>
    %183 = math.exp %182 : vector<2x128xf32>
    %cst_38 = arith.constant 1.000000e+00 : f32
    %184 = vector.broadcast %cst_38 : f32 to vector<2x128xf32>
    %185 = arith.addf %184, %183 : vector<2x128xf32>
    %186 = arith.divf %184, %185 : vector<2x128xf32>
    %187 = math.tanh %181 : vector<2x128xf32>
    %188 = vector.extract_strided_slice %186 {offsets = [0, 0], sizes = [2, 32], strides = [1, 1]} : vector<2x128xf32> to vector<2x32xf32>
    %189 = vector.extract_strided_slice %186 {offsets = [0, 32], sizes = [2, 32], strides = [1, 1]} : vector<2x128xf32> to vector<2x32xf32>
    %190 = vector.extract_strided_slice %187 {offsets = [0, 64], sizes = [2, 32], strides = [1, 1]} : vector<2x128xf32> to vector<2x32xf32>
    %191 = vector.extract_strided_slice %186 {offsets = [0, 96], sizes = [2, 32], strides = [1, 1]} : vector<2x128xf32> to vector<2x32xf32>
    %192 = arith.mulf %189, %153 : vector<2x32xf32>
    %193 = arith.mulf %188, %190 : vector<2x32xf32>
    %194 = arith.addf %192, %193 : vector<2x32xf32>
    %195 = math.tanh %194 : vector<2x32xf32>
    %196 = arith.mulf %191, %195 : vector<2x32xf32>
    %197 = vector.extract_strided_slice %9 {offsets = [10, 0], sizes = [2, 128], strides = [1, 1]} : vector<16x128xf32> to vector<2x128xf32>
    %198 = arith.truncf %174 : vector<2x32xf32> to vector<2x32xbf16>
    %cst_39 = arith.constant dense<0.000000e+00> : vector<2x128xf32>
    %199 = tpu.matmul %198, %2, %cst_39 {dimension_numbers = #tpu.dot_dimension_numbers<[1], [0], [0], [1], [0, 0, 1, 1], [], []>} : vector<2x32xbf16>, vector<32x128xbf16>, vector<2x128xf32> -> vector<2x128xf32>
    %200 = arith.addf %197, %199 : vector<2x128xf32>
    %201 = arith.negf %200 : vector<2x128xf32>
    %202 = math.exp %201 : vector<2x128xf32>
    %cst_40 = arith.constant 1.000000e+00 : f32
    %203 = vector.broadcast %cst_40 : f32 to vector<2x128xf32>
    %204 = arith.addf %203, %202 : vector<2x128xf32>
    %205 = arith.divf %203, %204 : vector<2x128xf32>
    %206 = math.tanh %200 : vector<2x128xf32>
    %207 = vector.extract_strided_slice %205 {offsets = [0, 0], sizes = [2, 32], strides = [1, 1]} : vector<2x128xf32> to vector<2x32xf32>
    %208 = vector.extract_strided_slice %205 {offsets = [0, 32], sizes = [2, 32], strides = [1, 1]} : vector<2x128xf32> to vector<2x32xf32>
    %209 = vector.extract_strided_slice %206 {offsets = [0, 64], sizes = [2, 32], strides = [1, 1]} : vector<2x128xf32> to vector<2x32xf32>
    %210 = vector.extract_strided_slice %205 {offsets = [0, 96], sizes = [2, 32], strides = [1, 1]} : vector<2x128xf32> to vector<2x32xf32>
    %211 = arith.mulf %208, %172 : vector<2x32xf32>
    %212 = arith.mulf %207, %209 : vector<2x32xf32>
    %213 = arith.addf %211, %212 : vector<2x32xf32>
    %214 = math.tanh %213 : vector<2x32xf32>
    %215 = arith.mulf %210, %214 : vector<2x32xf32>
    %216 = arith.truncf %174 : vector<2x32xf32> to vector<2x32xbf16>
    %cst_41 = arith.constant dense<0.000000e+00> : vector<2x128xf32>
    %217 = tpu.matmul %216, %1, %cst_41 {dimension_numbers = #tpu.dot_dimension_numbers<[1], [0], [0], [1], [0, 0, 1, 1], [], []>} : vector<2x32xbf16>, vector<32x128xbf16>, vector<2x128xf32> -> vector<2x128xf32>
    %218 = vector.broadcast %5 : vector<1x128xf32> to vector<2x128xf32>
    %219 = arith.addf %217, %218 : vector<2x128xf32>
    %220 = arith.truncf %196 : vector<2x32xf32> to vector<2x32xbf16>
    %cst_42 = arith.constant dense<0.000000e+00> : vector<2x128xf32>
    %221 = tpu.matmul %220, %3, %cst_42 {dimension_numbers = #tpu.dot_dimension_numbers<[1], [0], [0], [1], [0, 0, 1, 1], [], []>} : vector<2x32xbf16>, vector<32x128xbf16>, vector<2x128xf32> -> vector<2x128xf32>
    %222 = arith.addf %219, %221 : vector<2x128xf32>
    %223 = arith.negf %222 : vector<2x128xf32>
    %224 = math.exp %223 : vector<2x128xf32>
    %cst_43 = arith.constant 1.000000e+00 : f32
    %225 = vector.broadcast %cst_43 : f32 to vector<2x128xf32>
    %226 = arith.addf %225, %224 : vector<2x128xf32>
    %227 = arith.divf %225, %226 : vector<2x128xf32>
    %228 = math.tanh %222 : vector<2x128xf32>
    %229 = vector.extract_strided_slice %227 {offsets = [0, 0], sizes = [2, 32], strides = [1, 1]} : vector<2x128xf32> to vector<2x32xf32>
    %230 = vector.extract_strided_slice %227 {offsets = [0, 32], sizes = [2, 32], strides = [1, 1]} : vector<2x128xf32> to vector<2x32xf32>
    %231 = vector.extract_strided_slice %228 {offsets = [0, 64], sizes = [2, 32], strides = [1, 1]} : vector<2x128xf32> to vector<2x32xf32>
    %232 = vector.extract_strided_slice %227 {offsets = [0, 96], sizes = [2, 32], strides = [1, 1]} : vector<2x128xf32> to vector<2x32xf32>
    %233 = arith.mulf %230, %194 : vector<2x32xf32>
    %234 = arith.mulf %229, %231 : vector<2x32xf32>
    %235 = arith.addf %233, %234 : vector<2x32xf32>
    %236 = math.tanh %235 : vector<2x32xf32>
    %237 = arith.mulf %232, %236 : vector<2x32xf32>
    %238 = vector.extract_strided_slice %9 {offsets = [12, 0], sizes = [2, 128], strides = [1, 1]} : vector<16x128xf32> to vector<2x128xf32>
    %239 = arith.truncf %215 : vector<2x32xf32> to vector<2x32xbf16>
    %cst_44 = arith.constant dense<0.000000e+00> : vector<2x128xf32>
    %240 = tpu.matmul %239, %2, %cst_44 {dimension_numbers = #tpu.dot_dimension_numbers<[1], [0], [0], [1], [0, 0, 1, 1], [], []>} : vector<2x32xbf16>, vector<32x128xbf16>, vector<2x128xf32> -> vector<2x128xf32>
    %241 = arith.addf %238, %240 : vector<2x128xf32>
    %242 = arith.negf %241 : vector<2x128xf32>
    %243 = math.exp %242 : vector<2x128xf32>
    %cst_45 = arith.constant 1.000000e+00 : f32
    %244 = vector.broadcast %cst_45 : f32 to vector<2x128xf32>
    %245 = arith.addf %244, %243 : vector<2x128xf32>
    %246 = arith.divf %244, %245 : vector<2x128xf32>
    %247 = math.tanh %241 : vector<2x128xf32>
    %248 = vector.extract_strided_slice %246 {offsets = [0, 0], sizes = [2, 32], strides = [1, 1]} : vector<2x128xf32> to vector<2x32xf32>
    %249 = vector.extract_strided_slice %246 {offsets = [0, 32], sizes = [2, 32], strides = [1, 1]} : vector<2x128xf32> to vector<2x32xf32>
    %250 = vector.extract_strided_slice %247 {offsets = [0, 64], sizes = [2, 32], strides = [1, 1]} : vector<2x128xf32> to vector<2x32xf32>
    %251 = vector.extract_strided_slice %246 {offsets = [0, 96], sizes = [2, 32], strides = [1, 1]} : vector<2x128xf32> to vector<2x32xf32>
    %252 = arith.mulf %249, %213 : vector<2x32xf32>
    %253 = arith.mulf %248, %250 : vector<2x32xf32>
    %254 = arith.addf %252, %253 : vector<2x32xf32>
    %255 = math.tanh %254 : vector<2x32xf32>
    %256 = arith.mulf %251, %255 : vector<2x32xf32>
    %257 = arith.truncf %215 : vector<2x32xf32> to vector<2x32xbf16>
    %cst_46 = arith.constant dense<0.000000e+00> : vector<2x128xf32>
    %258 = tpu.matmul %257, %1, %cst_46 {dimension_numbers = #tpu.dot_dimension_numbers<[1], [0], [0], [1], [0, 0, 1, 1], [], []>} : vector<2x32xbf16>, vector<32x128xbf16>, vector<2x128xf32> -> vector<2x128xf32>
    %259 = vector.broadcast %5 : vector<1x128xf32> to vector<2x128xf32>
    %260 = arith.addf %258, %259 : vector<2x128xf32>
    %261 = arith.truncf %237 : vector<2x32xf32> to vector<2x32xbf16>
    %cst_47 = arith.constant dense<0.000000e+00> : vector<2x128xf32>
    %262 = tpu.matmul %261, %3, %cst_47 {dimension_numbers = #tpu.dot_dimension_numbers<[1], [0], [0], [1], [0, 0, 1, 1], [], []>} : vector<2x32xbf16>, vector<32x128xbf16>, vector<2x128xf32> -> vector<2x128xf32>
    %263 = arith.addf %260, %262 : vector<2x128xf32>
    %264 = arith.negf %263 : vector<2x128xf32>
    %265 = math.exp %264 : vector<2x128xf32>
    %cst_48 = arith.constant 1.000000e+00 : f32
    %266 = vector.broadcast %cst_48 : f32 to vector<2x128xf32>
    %267 = arith.addf %266, %265 : vector<2x128xf32>
    %268 = arith.divf %266, %267 : vector<2x128xf32>
    %269 = math.tanh %263 : vector<2x128xf32>
    %270 = vector.extract_strided_slice %268 {offsets = [0, 0], sizes = [2, 32], strides = [1, 1]} : vector<2x128xf32> to vector<2x32xf32>
    %271 = vector.extract_strided_slice %268 {offsets = [0, 32], sizes = [2, 32], strides = [1, 1]} : vector<2x128xf32> to vector<2x32xf32>
    %272 = vector.extract_strided_slice %269 {offsets = [0, 64], sizes = [2, 32], strides = [1, 1]} : vector<2x128xf32> to vector<2x32xf32>
    %273 = vector.extract_strided_slice %268 {offsets = [0, 96], sizes = [2, 32], strides = [1, 1]} : vector<2x128xf32> to vector<2x32xf32>
    %274 = arith.mulf %271, %235 : vector<2x32xf32>
    %275 = arith.mulf %270, %272 : vector<2x32xf32>
    %276 = arith.addf %274, %275 : vector<2x32xf32>
    %277 = math.tanh %276 : vector<2x32xf32>
    %278 = arith.mulf %273, %277 : vector<2x32xf32>
    %279 = vector.extract_strided_slice %9 {offsets = [14, 0], sizes = [2, 128], strides = [1, 1]} : vector<16x128xf32> to vector<2x128xf32>
    %280 = arith.truncf %256 : vector<2x32xf32> to vector<2x32xbf16>
    %cst_49 = arith.constant dense<0.000000e+00> : vector<2x128xf32>
    %281 = tpu.matmul %280, %2, %cst_49 {dimension_numbers = #tpu.dot_dimension_numbers<[1], [0], [0], [1], [0, 0, 1, 1], [], []>} : vector<2x32xbf16>, vector<32x128xbf16>, vector<2x128xf32> -> vector<2x128xf32>
    %282 = arith.addf %279, %281 : vector<2x128xf32>
    %283 = arith.negf %282 : vector<2x128xf32>
    %284 = math.exp %283 : vector<2x128xf32>
    %cst_50 = arith.constant 1.000000e+00 : f32
    %285 = vector.broadcast %cst_50 : f32 to vector<2x128xf32>
    %286 = arith.addf %285, %284 : vector<2x128xf32>
    %287 = arith.divf %285, %286 : vector<2x128xf32>
    %288 = math.tanh %282 : vector<2x128xf32>
    %289 = vector.extract_strided_slice %287 {offsets = [0, 0], sizes = [2, 32], strides = [1, 1]} : vector<2x128xf32> to vector<2x32xf32>
    %290 = vector.extract_strided_slice %287 {offsets = [0, 32], sizes = [2, 32], strides = [1, 1]} : vector<2x128xf32> to vector<2x32xf32>
    %291 = vector.extract_strided_slice %288 {offsets = [0, 64], sizes = [2, 32], strides = [1, 1]} : vector<2x128xf32> to vector<2x32xf32>
    %292 = vector.extract_strided_slice %287 {offsets = [0, 96], sizes = [2, 32], strides = [1, 1]} : vector<2x128xf32> to vector<2x32xf32>
    %293 = arith.mulf %290, %254 : vector<2x32xf32>
    %294 = arith.mulf %289, %291 : vector<2x32xf32>
    %295 = arith.addf %293, %294 : vector<2x32xf32>
    %296 = math.tanh %295 : vector<2x32xf32>
    %297 = arith.mulf %292, %296 : vector<2x32xf32>
    %298 = arith.truncf %256 : vector<2x32xf32> to vector<2x32xbf16>
    %cst_51 = arith.constant dense<0.000000e+00> : vector<2x128xf32>
    %299 = tpu.matmul %298, %1, %cst_51 {dimension_numbers = #tpu.dot_dimension_numbers<[1], [0], [0], [1], [0, 0, 1, 1], [], []>} : vector<2x32xbf16>, vector<32x128xbf16>, vector<2x128xf32> -> vector<2x128xf32>
    %300 = vector.broadcast %5 : vector<1x128xf32> to vector<2x128xf32>
    %301 = arith.addf %299, %300 : vector<2x128xf32>
    %302 = arith.truncf %278 : vector<2x32xf32> to vector<2x32xbf16>
    %cst_52 = arith.constant dense<0.000000e+00> : vector<2x128xf32>
    %303 = tpu.matmul %302, %3, %cst_52 {dimension_numbers = #tpu.dot_dimension_numbers<[1], [0], [0], [1], [0, 0, 1, 1], [], []>} : vector<2x32xbf16>, vector<32x128xbf16>, vector<2x128xf32> -> vector<2x128xf32>
    %304 = arith.addf %301, %303 : vector<2x128xf32>
    %305 = arith.negf %304 : vector<2x128xf32>
    %306 = math.exp %305 : vector<2x128xf32>
    %cst_53 = arith.constant 1.000000e+00 : f32
    %307 = vector.broadcast %cst_53 : f32 to vector<2x128xf32>
    %308 = arith.addf %307, %306 : vector<2x128xf32>
    %309 = arith.divf %307, %308 : vector<2x128xf32>
    %310 = math.tanh %304 : vector<2x128xf32>
    %311 = vector.extract_strided_slice %309 {offsets = [0, 0], sizes = [2, 32], strides = [1, 1]} : vector<2x128xf32> to vector<2x32xf32>
    %312 = vector.extract_strided_slice %309 {offsets = [0, 32], sizes = [2, 32], strides = [1, 1]} : vector<2x128xf32> to vector<2x32xf32>
    %313 = vector.extract_strided_slice %310 {offsets = [0, 64], sizes = [2, 32], strides = [1, 1]} : vector<2x128xf32> to vector<2x32xf32>
    %314 = vector.extract_strided_slice %309 {offsets = [0, 96], sizes = [2, 32], strides = [1, 1]} : vector<2x128xf32> to vector<2x32xf32>
    %315 = arith.mulf %312, %276 : vector<2x32xf32>
    %316 = arith.mulf %311, %313 : vector<2x32xf32>
    %317 = arith.addf %315, %316 : vector<2x32xf32>
    %318 = math.tanh %317 : vector<2x32xf32>
    %319 = arith.mulf %314, %318 : vector<2x32xf32>
    %320 = arith.truncf %297 : vector<2x32xf32> to vector<2x32xbf16>
    %cst_54 = arith.constant dense<0.000000e+00> : vector<2x128xf32>
    %321 = tpu.matmul %320, %1, %cst_54 {dimension_numbers = #tpu.dot_dimension_numbers<[1], [0], [0], [1], [0, 0, 1, 1], [], []>} : vector<2x32xbf16>, vector<32x128xbf16>, vector<2x128xf32> -> vector<2x128xf32>
    %322 = vector.broadcast %5 : vector<1x128xf32> to vector<2x128xf32>
    %323 = arith.addf %321, %322 : vector<2x128xf32>
    %324 = arith.truncf %319 : vector<2x32xf32> to vector<2x32xbf16>
    %cst_55 = arith.constant dense<0.000000e+00> : vector<2x128xf32>
    %325 = tpu.matmul %324, %3, %cst_55 {dimension_numbers = #tpu.dot_dimension_numbers<[1], [0], [0], [1], [0, 0, 1, 1], [], []>} : vector<2x32xbf16>, vector<32x128xbf16>, vector<2x128xf32> -> vector<2x128xf32>
    %326 = arith.addf %323, %325 : vector<2x128xf32>
    %327 = arith.negf %326 : vector<2x128xf32>
    %328 = math.exp %327 : vector<2x128xf32>
    %cst_56 = arith.constant 1.000000e+00 : f32
    %329 = vector.broadcast %cst_56 : f32 to vector<2x128xf32>
    %330 = arith.addf %329, %328 : vector<2x128xf32>
    %331 = arith.divf %329, %330 : vector<2x128xf32>
    %332 = math.tanh %326 : vector<2x128xf32>
    %333 = vector.extract_strided_slice %331 {offsets = [0, 0], sizes = [2, 32], strides = [1, 1]} : vector<2x128xf32> to vector<2x32xf32>
    %334 = vector.extract_strided_slice %331 {offsets = [0, 32], sizes = [2, 32], strides = [1, 1]} : vector<2x128xf32> to vector<2x32xf32>
    %335 = vector.extract_strided_slice %332 {offsets = [0, 64], sizes = [2, 32], strides = [1, 1]} : vector<2x128xf32> to vector<2x32xf32>
    %336 = vector.extract_strided_slice %331 {offsets = [0, 96], sizes = [2, 32], strides = [1, 1]} : vector<2x128xf32> to vector<2x32xf32>
    %337 = arith.mulf %334, %317 : vector<2x32xf32>
    %338 = arith.mulf %333, %335 : vector<2x32xf32>
    %339 = arith.addf %337, %338 : vector<2x32xf32>
    %340 = math.tanh %339 : vector<2x32xf32>
    %341 = arith.mulf %336, %340 : vector<2x32xf32>
    %342 = tpu.concatenate %73, %114, %155, %196, %237, %278, %319, %341 in 0 : vector<2x32xf32>, vector<2x32xf32>, vector<2x32xf32>, vector<2x32xf32>, vector<2x32xf32>, vector<2x32xf32>, vector<2x32xf32>, vector<2x32xf32> -> vector<16x32xf32>
    %343 = arith.truncf %342 : vector<16x32xf32> to vector<16x32xbf16>
    %c0_57 = arith.constant 0 : index
    %c0_58 = arith.constant 0 : index
    %344 = vector.load %arg8[%c0_57, %c0_58] : memref<32x32xbf16, #tpu.memory_space<vmem>>, vector<32x32xbf16>
    %cst_59 = arith.constant dense<0.000000e+00> : vector<16x32xf32>
    %345 = tpu.matmul %343, %344, %cst_59 {dimension_numbers = #tpu.dot_dimension_numbers<[1], [0], [0], [1], [0, 0, 1, 1], [], []>} : vector<16x32xbf16>, vector<32x32xbf16>, vector<16x32xf32> -> vector<16x32xf32>
    %c0_60 = arith.constant 0 : index
    %c0_61 = arith.constant 0 : index
    %346 = vector.load %arg9[%c0_60, %c0_61] : memref<1x32xf32, #tpu.memory_space<vmem>>, vector<1x32xf32>
    %347 = vector.broadcast %346 : vector<1x32xf32> to vector<16x32xf32>
    %348 = arith.addf %345, %347 : vector<16x32xf32>
    %cst_62 = arith.constant dense<0xFF800000> : vector<16xf32>
    %349 = vector.multi_reduction <maximumf>, %348, %cst_62 [1] : vector<16x32xf32> to vector<16xf32>
    %350 = vector.shape_cast %349 : vector<16xf32> to vector<16x1xf32>
    %351 = vector.broadcast %350 : vector<16x1xf32> to vector<16x32xf32>
    %352 = arith.subf %348, %351 : vector<16x32xf32>
    %353 = math.exp %352 : vector<16x32xf32>
    %cst_63 = arith.constant dense<0.000000e+00> : vector<16xf32>
    %354 = vector.multi_reduction <add>, %353, %cst_63 [1] : vector<16x32xf32> to vector<16xf32>
    %355 = vector.shape_cast %354 : vector<16xf32> to vector<16x1xf32>
    %356 = math.log %355 : vector<16x1xf32>
    %357 = vector.broadcast %356 : vector<16x1xf32> to vector<16x32xf32>
    %358 = arith.subf %352, %357 : vector<16x32xf32>
    %c0_64 = arith.constant 0 : index
    %c0_65 = arith.constant 0 : index
    %359 = vector.load %arg10[%c0_64, %c0_65] : memref<16x32xf32, #tpu.memory_space<vmem>>, vector<16x32xf32>
    tpu.vector_store %arg10[%c0_64, %c0_65], %358 {strides = array<i32>} : memref<16x32xf32, #tpu.memory_space<vmem>>, vector<16x32xf32>,
    return
  }
  func.func @transform_0(%arg0: i32) -> (i32, i32) {
    %c0_i32 = arith.constant 0 : i32
    %c0_i32_0 = arith.constant 0 : i32
    %c0_i32_1 = arith.constant 0 : i32
    return %c0_i32, %c0_i32_0 : i32, i32
  }
  func.func @transform_1(%arg0: i32) -> (i32, i32) {
    %c0_i32 = arith.constant 0 : i32
    %c0_i32_0 = arith.constant 0 : i32
    %c0_i32_1 = arith.constant 0 : i32
    return %c0_i32, %c0_i32_0 : i32, i32
  }
  func.func @transform_2(%arg0: i32) -> (i32, i32) {
    %c0_i32 = arith.constant 0 : i32
    %c0_i32_0 = arith.constant 0 : i32
    %c0_i32_1 = arith.constant 0 : i32
    return %c0_i32, %c0_i32_0 : i32, i32
  }
  func.func @transform_3(%arg0: i32) -> (i32, i32) {
    %c0_i32 = arith.constant 0 : i32
    %c0_i32_0 = arith.constant 0 : i32
    %c0_i32_1 = arith.constant 0 : i32
    return %c0_i32, %c0_i32_0 : i32, i32
  }
  func.func @transform_4(%arg0: i32) -> (i32, i32) {
    %c0_i32 = arith.constant 0 : i32
    %c0_i32_0 = arith.constant 0 : i32
    %c0_i32_1 = arith.constant 0 : i32
    return %c0_i32, %c0_i32_0 : i32, i32
  }
  func.func @transform_5(%arg0: i32) -> (i32, i32) {
    %c0_i32 = arith.constant 0 : i32
    %c0_i32_0 = arith.constant 0 : i32
    %c0_i32_1 = arith.constant 0 : i32
    return %c0_i32, %c0_i32_0 : i32, i32
  }
  func.func @transform_6(%arg0: i32) -> (i32, i32) {
    %c0_i32 = arith.constant 0 : i32
    %c0_i32_0 = arith.constant 0 : i32
    %c0_i32_1 = arith.constant 0 : i32
    return %c0_i32, %c0_i32_0 : i32, i32
  }
  func.func @transform_7(%arg0: i32) -> (i32, i32) {
    %c0_i32 = arith.constant 0 : i32
    %c0_i32_0 = arith.constant 0 : i32
    %c0_i32_1 = arith.constant 0 : i32
    return %c0_i32, %c0_i32_0 : i32, i32
  }
  func.func @transform_8(%arg0: i32) -> (i32, i32) {
    %c0_i32 = arith.constant 0 : i32
    %c0_i32_0 = arith.constant 0 : i32
    %c0_i32_1 = arith.constant 0 : i32
    return %c0_i32, %c0_i32_0 : i32, i32
  }
  func.func @transform_9(%arg0: i32) -> (i32, i32) {
    %c0_i32 = arith.constant 0 : i32
    %c0_i32_0 = arith.constant 0 : i32
    %c0_i32_1 = arith.constant 0 : i32
    return %c0_i32, %c0_i32_0 : i32, i32
  }
}

</mosaic_0001>

<bundles_post_ra>
// kernel: char_predictor_forward.1
= control target key start
LH: loop header
LB: loop body
LE: loop exit
PB: predicated region body
PF: predicated region fallthrough
CT: control target
= control target key end

     0   :  { %14 = vsyncpa [#allocation3], 0  ;;  %s2380_s30 = smov [#allocation2]   ;;  %s2859_s0 = inlined_call_operand.vmem [shape: bf16[16,32], index: 0, kind: input, shape index: {}]   ;;  %s2860_s1 = inlined_call_operand.vmem [shape: bf16[32,128], index: 1, kind: input, shape index: {}]   ;;  %s2861_s2 = inlined_call_operand.vmem [shape: bf16[32,128], index: 2, kind: input, shape index: {}]   ;;  %s2862_s3 = inlined_call_operand.vmem [shape: f32[1,128], index: 3, kind: input, shape index: {}]   ;;  %s2863_s4 = inlined_call_operand.vmem [shape: bf16[32,128], index: 4, kind: input, shape index: {}]   ;;  %s2864_s5 = inlined_call_operand.hbm [shape: bf16[32,128], index: 5, kind: input, shape index: {}]   ;;  %s2865_s6 = inlined_call_operand.vmem [shape: f32[1,128], index: 6, kind: input, shape index: {}]   ;;  %s2866_s7 = inlined_call_operand.vmem [shape: bf16[32,32], index: 7, kind: input, shape index: {}]   ;;  %s2867_s8 = inlined_call_operand.vmem [shape: f32[1,32], index: 8, kind: input, shape index: {}]   ;;  %s2868_s9 = inlined_call_operand.vmem [shape: f32[16,32], index: 9, kind: output, shape index: {}]  }
   0x1   :  { %s30_s10 = sshll.u32 %s2380_s30, 4  ;;  %s2356_s13 = scalar_lea.hbm %s2864_s5, 256  ;;  %s31_s10 = int_to_ptr.vmem [resolvable:$true] %s30_s10 }
   0x2   :  { %p2357_p0 = scmp.ne.s32.totalorder %s2864_s5, %s2356_s13  ;;  %p2360_p1 = scmp.lt.u32.totalorder %s2356_s13, %s2864_s5 }
   0x4   :  { %p2362_p2 = pnand %p2360_p1, %p2357_p0 }
   0x6   :  { %2365 = shalt.err (!%p2362_p2)
}
   0x7   :  { %s2366_s18 = scalar_lea.vmem %s31_s10, 256  ;;  %p2371_p4 = scmp.lt.s32.totalorder %s31_s10, %s31_s10 }
   0x8   :  { %p2367_p3 = scmp.ne.s32.totalorder %s31_s10, %s2366_s18  ;;  %p2372_p5 = scmp.lt.s32.totalorder %s2366_s18, %s2366_s18 }
   0xa   :  { %p2373_p6 = por %p2372_p5, %p2371_p4 }
   0xc   :  { %p2374_p7 = pnand %p2373_p6, %p2367_p3 }
   0xe   :  { %2377 = shalt.err (!%p2374_p7)
}
   0xf   :  { %s2381_s19 = smov 64   ;;  %s2382_s20 = smov 4  }
  0x10   :  { %36 = dma.hbm_to_vmem [thread:$0]  %s2864_s5, 256, %s31_s10, [#allocation3], %s2381_s19, %s2381_s19, %s2382_s20  }
  0x11   :  { %2378 = dma.done.wait [#allocation3], 256  }
  0x12   :  { %2379 = vsyncadd [#allocation3], 4294967040  ;;  %v2383_v0 = vmov 0.0   ;;  %vm2384_vm0 = vmmov 0   ;;  %v2206_v1 = vld [vmem:[%s2860_s1] sm:$0xff]   ;;  %v2208_v3 = vld [vmem:[%s2860_s1 + $0x8] sm:$0xff]  }
  0x13   :  { %1951 = vmatprep.subr.bf16.mxu0 %v2383_v0  ;;  %1959 = vmatprep.subr.bf16.mxu1 %v2383_v0  ;;  %v2463_v2 = vld [vmem:[%s2861_s2] sm:$0xff]   ;;  %v2473_v4 = vld [vmem:[%s2861_s2 + $0x8] sm:$0xff]   ;;  %vm90_vm1 = vcmask 261120   ;;  %v2385_v6 = vmov 0   ;;  %s2386_s2 = smov 32   ;;  %vm1708_vm2 = vcmask 1041408  }
  0x14   :  { %1955 = vmatprep.mubr.msk.bf16.mxu0 %vm2384_vm0, %v2383_v0  ;;  %1963 = vmatprep.mubr.msk.bf16.mxu1 %vm2384_vm0, %v2383_v0  ;;  %v2210_v5 = vld [vmem:[%s2859_s0] sm:$0xff]   ;;  %v2514_v30 = vld [vmem:[%s2863_s4 + $0x8] sm:$0xff]   ;;  %vm1710_vm3 = vcmask 1043456   ;;  %vm1712_vm4 = vcmask 1045504  }
  0x15   :  { %1952 = vmatpush3.bf16.msra.mxu0 %v2206_v1  ;;  %1960 = vmatpush3.bf16.msra.mxu1 %v2463_v2  ;;  %v1819_v7 = vld [vmem:[%s2862_s3] ss:$0 sm:$0xff]  ;;  %v2526_v37 = vld [vmem:[#allocation2 + $0x8] sm:$0xff]  }
  0x16   :  { %1953 = vmatprep.subr.bf16.mxu0 %v2383_v0  ;;  %1961 = vmatprep.subr.bf16.mxu1 %v2383_v0  ;;  %v2508_v29 = vld [vmem:[%s2863_s4] sm:$0xff]  }
  0x17   :  { %v2521_v35 = vld [vmem:[#allocation2] sm:$0xff]  }
  0x18   :  { %v2550_v44 = vld [vmem:[%s2865_s6] ss:$0 sm:$0xff] }
  0x19   :  { %1954 = vmatpush3.bf16.msra.mxu0 %v2208_v3  ;;  %1962 = vmatpush3.bf16.msra.mxu1 %v2473_v4 }
  0x1a   :  { %1967 = vmatprep.subr.bf16.mxu0 %v2383_v0  ;;  %1975 = vmatprep.subr.bf16.mxu1 %v2383_v0 }
  0x1c   :  { %1956 = vmatmul.mubr.msk.bf16.vlgmr.msra.gmra.mrb[0].mxu0 %vm90_vm1, %v2210_v5  ;;  %1964 = vmatmul.mubr.bf16.vlgmr.msra.gmra.mrb[0].mxu1 %v2385_v6 }
  0x1d   :  { %1968 = vmatpush3.bf16.msra.mxu0 %v2463_v2  ;;  %1971 = vmatprep.mubr.msk.bf16.mxu0 %vm2384_vm0, %v2383_v0 }
  0x1e   :  { %1969 = vmatprep.subr.bf16.mxu0 %v2383_v0  ;;  %1979 = vmatprep.mubr.msk.bf16.mxu1 %vm2384_vm0, %v2383_v0 }
  0x1f   :  { %1976 = vmatpush3.bf16.msra.mxu1 %v2508_v29 }
  0x20   :  { %1977 = vmatprep.subr.bf16.mxu1 %v2383_v0 }
  0x21   :  { %1970 = vmatpush3.bf16.msra.mxu0 %v2473_v4 }
  0x22   :  { %1991 = vmatprep.subr.bf16.mxu0 %v2383_v0 }
  0x23   :  { %1978 = vmatpush3.bf16.msra.mxu1 %v2514_v30 }
  0x24   :  { %1983 = vmatprep.subr.bf16.mxu1 %v2383_v0 }
  0xef   :  { %v128_v8 = vpop.f32.mrb[0].mxu0  ;;  %v184_v10 = vpop.f32.mrb[0].mxu1 }
  0xf0   :  { %v2495_v9 = vadd.f32 %v1819_v7, %v128_v8  ;;  %v1957_v11 = vpop.f32.mrb[1].mxu0  ;;  %v1965_v12 = vpop.f32.mrb[1].mxu1 }
  0xf1   :  { %v131_v13 = vpop.f32.mrb[2].mxu0  ;;  %v187_v16 = vpop.f32.mrb[2].mxu1 }
  0xf2   :  { %v190_v14 = vadd.f32 %v184_v10, %v2495_v9  ;;  %v2498_v15 = vadd.f32 %v1819_v7, %v131_v13  ;;  %v1958_v17 = vpop.f32.mrb[3].mxu0  ;;  %v1966_v18 = vpop.f32.mrb[3].mxu1 }
  0xf4   :  { %2217 = vtanh.f32 %v190_v14  ;;  %v1826_v20 = vmul.f32 -1.442695, %v190_v14 }
  0xf6   :  { %2219 = vpow2.f32 %v1826_v20 }
  0xfe   :  { %v2218_v19 = vpop.eup %2217 }
  0xff   :  { %200 = vrot.lane.b32.xlu0 %v2218_v19, %s2381_s19 }
 0x100   :  { %v2220_v21 = vpop.eup %2219 }
 0x101   :  { %v194_v22 = vadd.f32 1.0, %v2220_v21 }
 0x103   :  { %2221 = vrcp.f32 %v194_v22 }
 0x10d   :  { %v2222_v23 = vpop.eup %2221 }
 0x10e   :  { %v198_v26 = vmul.f32 0.0, %v2222_v23 }
 0x171   :  { %v201_v24 = vpop.permute.xlu0 %200 }
 0x172   :  { %v203_v25 = vmul.f32 %v2222_v23, %v201_v24 }
 0x174   :  { %205 = vrot.lane.b32.xlu0 %v203_v25, %s2386_s2 }
 0x1e6   :  { %v206_v27 = vpop.permute.xlu0 %205 }
 0x1e7   :  { %v2502_v28 = vadd.f32 %v206_v27, %v198_v26 }
 0x1e9   :  { %2223 = vtanh.f32 %v2502_v28  ;;  %v274_v1 = vrot.slane %v2502_v28, 6 }
 0x1f3   :  { %v2224_v31 = vpop.eup %2223 }
 0x1f4   :  { %211 = vrot.lane.b32.xlu1 %v2224_v31, %s2381_s19 }
 0x266   :  { %v212_v32 = vpop.permute.xlu1 %211 }
 0x267   :  { %v214_v33 = vmul.f32 %v2222_v23, %v212_v32 }
 0x269   :  { %v215_v34 = vpack.c.bf16 %v214_v33, %v214_v33 }
 0x26b   :  { %217 = vrot.lane.b32.xlu1 %v215_v34, %s2386_s2 }
 0x2dd   :  { %v218_v36 = vpop.permute.xlu1 %217 }
 0x2de   :  { %1972 = vmatmul.mubr.msk.bf16.vlgmr.msra.gmra.mrb[4].mxu0 %vm90_vm1, %v218_v36  ;;  %1980 = vmatmul.mubr.msk.bf16.vlgmr.msra.gmra.mrb[4].mxu1 %vm90_vm1, %v218_v36 }
 0x2df   :  { %1984 = vmatpush3.bf16.msra.mxu1 %v2521_v35  ;;  %1987 = vmatprep.mubr.msk.bf16.mxu1 %vm2384_vm0, %v2383_v0 }
 0x2e0   :  { %1985 = vmatprep.subr.bf16.mxu1 %v2383_v0  ;;  %1992 = vmatpush3.bf16.msra.mxu0 %v2463_v2 }
 0x2e1   :  { %1993 = vmatprep.subr.bf16.mxu0 %v2383_v0  ;;  %1995 = vmatprep.mubr.msk.bf16.mxu0 %vm2384_vm0, %v2383_v0 }
 0x2e3   :  { %1986 = vmatpush3.bf16.msra.mxu1 %v2526_v37 }
 0x2e4   :  { %1994 = vmatpush3.bf16.msra.mxu0 %v2473_v4  ;;  %2015 = vmatprep.subr.bf16.mxu1 %v2383_v0 }
 0x2e5   :  { %1999 = vmatprep.subr.bf16.mxu0 %v2383_v0 }
 0x2ea   :  { %1988 = vmatmul.mubr.bf16.vlgmr.msra.gmra.mrb[4].mxu1 %v2385_v6 }
 0x2eb   :  { %2016 = vmatpush3.bf16.msra.mxu1 %v2463_v2  ;;  %2019 = vmatprep.mubr.msk.bf16.mxu1 %vm2384_vm0, %v2383_v0 }
 0x2ec   :  { %2017 = vmatprep.subr.bf16.mxu1 %v2383_v0 }
 0x2ef   :  { %2018 = vmatpush3.bf16.msra.mxu1 %v2473_v4 }
 0x2f0   :  { %2023 = vmatprep.subr.bf16.mxu1 %v2383_v0 }
 0x3b1   :  { %v256_v38 = vpop.f32.mrb[4].mxu0 }
 0x3b2   :  { %v263_v39 = vrot.slane %v256_v38, 6  ;;  %v1973_v40 = vpop.f32.mrb[5].mxu0 }
 0x3b3   :  { %v259_v41 = vpop.f32.mrb[6].mxu0 }
 0x3b4   :  { %v265_v42 = vadd.f32 %v263_v39, %v2495_v9  ;;  %v1974_v43 = vpop.f32.mrb[7].mxu0 }
 0x3b6   :  { %2225 = vtanh.f32 %v265_v42  ;;  %v1828_v52 = vmul.f32 -1.442695, %v265_v42 }
 0x3bd   :  { %v397_v45 = vpop.f32.mrb[4].mxu1 }
 0x3be   :  { %v2159_v46 = vadd.f32 %v2550_v44, %v397_v45  ;;  %v1989_v47 = vpop.f32.mrb[5].mxu1 }
 0x3bf   :  { %v400_v48 = vpop.f32.mrb[6].mxu1 }
 0x3c0   :  { %v2226_v49 = vpop.eup %2225  ;;  %2227 = vtanh.f32 %v2159_v46  ;;  %v1990_v50 = vpop.f32.mrb[7].mxu1  ;;  %v1835_v53 = vmul.f32 -1.442695, %v2159_v46 }
 0x3c1   :  { %278 = vrot.lane.b32.xlu0 %v2226_v49, %s2381_s19  ;;  %2229 = vpow2.f32 %v1828_v52 }
 0x3c2   :  { %2231 = vpow2.f32 %v1835_v53 }
 0x3ca   :  { %v2228_v51 = vpop.eup %2227 }
 0x3cb   :  { %413 = vrot.lane.b32.xlu1 %v2228_v51, %s2381_s19  ;;  %v2230_v54 = vpop.eup %2229 }
 0x3cc   :  { %v269_v55 = vadd.f32 1.0, %v2230_v54  ;;  %v2232_v56 = vpop.eup %2231 }
 0x3cd   :  { %v407_v57 = vadd.f32 1.0, %v2232_v56 }
 0x3ce   :  { %2233 = vrcp.f32 %v269_v55 }
 0x3cf   :  { %2235 = vrcp.f32 %v407_v57 }
 0x3d8   :  { %v2234_v58 = vpop.eup %2233 }
 0x3d9   :  { %v2236_v61 = vpop.eup %2235  ;;  %v276_v3 = vmul.f32 %v2234_v58, %v274_v1 }
 0x3da   :  { %v411_v7 = vmul.f32 0.0, %v2236_v61 }
 0x433   :  { %v279_v59 = vpop.permute.xlu0 %278 }
 0x434   :  { %v281_v60 = vmul.f32 %v2234_v58, %v279_v59 }
 0x436   :  { %283 = vrot.lane.b32.xlu0 %v281_v60, %s2386_s2 }
 0x43d   :  { %v414_v62 = vpop.permute.xlu1 %413 }
 0x43e   :  { %v416_v63 = vmul.f32 %v2236_v61, %v414_v62 }
 0x440   :  { %418 = vrot.lane.b32.xlu1 %v416_v63, %s2386_s2 }
 0x4a8   :  { %v284_v5 = vpop.permute.xlu0 %283 }
 0x4a9   :  { %v2558_v6 = vadd.f32 %v284_v5, %v276_v3 }
 0x4ab   :  { %2237 = vtanh.f32 %v2558_v6  ;;  %v488_v53 = vrot.slane %v2558_v6, 6 }
 0x4b2   :  { %v419_v8 = vpop.permute.xlu1 %418 }
 0x4b3   :  { %v2561_v10 = vadd.f32 %v419_v8, %v411_v7 }
 0x4b5   :  { %v2238_v11 = vpop.eup %2237  ;;  %2239 = vtanh.f32 %v2561_v10 }
 0x4b6   :  { %289 = vrot.lane.b32.xlu0 %v2238_v11, %s2381_s19 }
 0x4bf   :  { %v2240_v12 = vpop.eup %2239 }
 0x4c0   :  { %424 = vrot.lane.b32.xlu1 %v2240_v12, %s2381_s19 }
 0x528   :  { %v290_v13 = vpop.permute.xlu0 %289 }
 0x529   :  { %v292_v14 = vmul.f32 %v2234_v58, %v290_v13 }
 0x52b   :  { %v428_v16 = vpack.c.bf16 %v292_v14, %v292_v14 }
 0x52d   :  { %v430_v17 = vrot.slane %v428_v16, 1 }
 0x52f   :  { %431 = vrot.lane.b32.xlu0 %v430_v17, %s2386_s2 }
 0x532   :  { %v425_v18 = vpop.permute.xlu1 %424 }
 0x533   :  { %v2567_v19 = vmul.f32 %v2236_v61, %v425_v18 }
 0x535   :  { %v547_v20 = vpack.c.bf16 %v2567_v19, %v2567_v19 }
 0x537   :  { %549 = vrot.lane.b32.xlu1 %v547_v20, %s2386_s2 }
 0x5a1   :  { %v432_v21 = vpop.permute.xlu0 %431 }
 0x5a2   :  { %1996 = vmatmul.mubr.msk.bf16.vlgmr.msra.gmra.mrb[8].mxu0 %vm90_vm1, %v432_v21 }
 0x5a3   :  { %2000 = vmatpush3.bf16.msra.mxu0 %v2508_v29  ;;  %2003 = vmatprep.mubr.msk.bf16.mxu0 %vm2384_vm0, %v2383_v0 }
 0x5a4   :  { %2001 = vmatprep.subr.bf16.mxu0 %v2383_v0 }
 0x5a7   :  { %2002 = vmatpush3.bf16.msra.mxu0 %v2514_v30 }
 0x5a8   :  { %2007 = vmatprep.subr.bf16.mxu0 %v2383_v0 }
 0x5a9   :  { %v550_v22 = vpop.permute.xlu1 %549 }
 0x5aa   :  { %2004 = vmatmul.mubr.msk.bf16.vlgmr.msra.gmra.mrb[12].mxu0 %vm90_vm1, %v432_v21 }
 0x5ab   :  { %2008 = vmatpush3.bf16.msra.mxu0 %v2521_v35  ;;  %2011 = vmatprep.mubr.msk.bf16.mxu0 %vm2384_vm0, %v2383_v0 }
 0x5ac   :  { %2009 = vmatprep.subr.bf16.mxu0 %v2383_v0 }
 0x5af   :  { %2010 = vmatpush3.bf16.msra.mxu0 %v2526_v37 }
 0x5b0   :  { %2039 = vmatprep.subr.bf16.mxu0 %v2383_v0 }
 0x5b6   :  { %2012 = vmatmul.mubr.msk.bf16.vlgmr.msra.gmra.mrb[12].mxu0 %vm90_vm1, %v550_v22 }
 0x5b7   :  { %2040 = vmatpush3.bf16.msra.mxu0 %v2463_v2  ;;  %2043 = vmatprep.mubr.msk.bf16.mxu0 %vm2384_vm0, %v2383_v0 }
 0x5b8   :  { %2041 = vmatprep.subr.bf16.mxu0 %v2383_v0 }
 0x5bb   :  { %2042 = vmatpush3.bf16.msra.mxu0 %v2473_v4 }
 0x5bc   :  { %2047 = vmatprep.subr.bf16.mxu0 %v2383_v0 }
 0x675   :  { %v470_v23 = vpop.f32.mrb[8].mxu0 }
 0x676   :  { %v477_v24 = vrot.slane %v470_v23, 4  ;;  %v1997_v25 = vpop.f32.mrb[9].mxu0 }
 0x677   :  { %v473_v26 = vpop.f32.mrb[10].mxu0 }
 0x678   :  { %v479_v27 = vadd.f32 %v477_v24, %v2495_v9  ;;  %v1998_v28 = vpop.f32.mrb[11].mxu0 }
 0x67a   :  { %2241 = vtanh.f32 %v479_v27  ;;  %v1837_v40 = vmul.f32 -1.442695, %v479_v27 }
 0x684   :  { %v2242_v31 = vpop.eup %2241 }
 0x685   :  { %492 = vrot.lane.b32.xlu0 %v2242_v31, %s2381_s19 }
 0x689   :  { %v588_v32 = vpop.f32.mrb[12].mxu0 }
 0x68a   :  { %v2160_v33 = vadd.f32 %v2550_v44, %v588_v32  ;;  %v2013_v34 = vpop.f32.mrb[13].mxu0 }
 0x68b   :  { %v591_v36 = vpop.f32.mrb[14].mxu0 }
 0x68c   :  { %2243 = vtanh.f32 %v2160_v33  ;;  %v2014_v38 = vpop.f32.mrb[15].mxu0  ;;  %v1840_v43 = vmul.f32 -1.442695, %v2160_v33 }
 0x68d   :  { %2245 = vpow2.f32 %v1837_v40 }
 0x696   :  { %v2244_v39 = vpop.eup %2243 }
 0x697   :  { %604 = vrot.lane.b32.xlu1 %v2244_v39, %s2381_s19  ;;  %v2246_v41 = vpop.eup %2245 }
 0x698   :  { %v483_v42 = vadd.f32 1.0, %v2246_v41 }
 0x69a   :  { %2247 = vrcp.f32 %v483_v42 }
 0x69b   :  { %2249 = vpow2.f32 %v1840_v43 }
 0x6a4   :  { %v2248_v45 = vpop.eup %2247 }
 0x6a5   :  { %v2250_v47 = vpop.eup %2249  ;;  %v490_v54 = vmul.f32 %v2248_v45, %v488_v53 }
 0x6a6   :  { %v598_v49 = vadd.f32 1.0, %v2250_v47 }
 0x6a8   :  { %2251 = vrcp.f32 %v598_v49 }
 0x6b2   :  { %v2252_v50 = vpop.eup %2251 }
 0x6b3   :  { %v602_v58 = vmul.f32 %v2252_v50, %v2561_v10 }
 0x6f7   :  { %v493_v46 = vpop.permute.xlu0 %492 }
 0x6f8   :  { %v495_v48 = vmul.f32 %v2248_v45, %v493_v46 }
 0x6fa   :  { %497 = vrot.lane.b32.xlu0 %v495_v48, %s2386_s2 }
 0x709   :  { %v605_v51 = vpop.permute.xlu1 %604 }
 0x70a   :  { %v607_v52 = vmul.f32 %v2252_v50, %v605_v51 }
 0x70c   :  { %609 = vrot.lane.b32.xlu1 %v607_v52, %s2386_s2 }
 0x76c   :  { %v498_v55 = vpop.permute.xlu0 %497 }
 0x76d   :  { %v2600_v56 = vadd.f32 %v498_v55, %v490_v54 }
 0x76f   :  { %2253 = vtanh.f32 %v2600_v56  ;;  %v679_v41 = vrot.slane %v2600_v56, 6 }
 0x779   :  { %v2254_v57 = vpop.eup %2253 }
 0x77a   :  { %503 = vrot.lane.b32.xlu0 %v2254_v57, %s2381_s19 }
 0x77e   :  { %v610_v59 = vpop.permute.xlu1 %609 }
 0x77f   :  { %v2605_v60 = vadd.f32 %v610_v59, %v602_v58 }
 0x781   :  { %2255 = vtanh.f32 %v2605_v60 }
 0x78b   :  { %v2256_v61 = vpop.eup %2255 }
 0x78c   :  { %615 = vrot.lane.b32.xlu1 %v2256_v61, %s2381_s19 }
 0x7ec   :  { %v504_v62 = vpop.permute.xlu0 %503 }
 0x7ed   :  { %v506_v63 = vmul.f32 %v2248_v45, %v504_v62 }
 0x7ef   :  { %v619_v1 = vpack.c.bf16 %v506_v63, %v506_v63 }
 0x7f1   :  { %v621_v3 = vrot.slane %v619_v1, 2 }
 0x7f3   :  { %622 = vrot.lane.b32.xlu0 %v621_v3, %s2386_s2 }
 0x7fe   :  { %v616_v5 = vpop.permute.xlu1 %615 }
 0x7ff   :  { %v2610_v6 = vmul.f32 %v2252_v50, %v616_v5 }
 0x801   :  { %v738_v7 = vpack.c.bf16 %v2610_v6, %v2610_v6  ;;  %v1691_v55 = vrot.slane %v2610_v6, 6 }
 0x803   :  { %740 = vrot.lane.b32.xlu1 %v738_v7, %s2386_s2 }
 0x865   :  { %v623_v8 = vpop.permute.xlu0 %622 }
 0x866   :  { %2020 = vmatmul.mubr.msk.bf16.vlgmr.msra.gmra.mrb[8].mxu1 %vm90_vm1, %v623_v8 }
 0x867   :  { %2024 = vmatpush3.bf16.msra.mxu1 %v2508_v29  ;;  %2027 = vmatprep.mubr.msk.bf16.mxu1 %vm2384_vm0, %v2383_v0 }
 0x868   :  { %2025 = vmatprep.subr.bf16.mxu1 %v2383_v0 }
 0x86b   :  { %2026 = vmatpush3.bf16.msra.mxu1 %v2514_v30 }
 0x86c   :  { %2031 = vmatprep.subr.bf16.mxu1 %v2383_v0 }
 0x86e   :  { %2028 = vmatmul.mubr.msk.bf16.vlgmr.msra.gmra.mrb[12].mxu1 %vm90_vm1, %v623_v8 }
 0x86f   :  { %2032 = vmatpush3.bf16.msra.mxu1 %v2521_v35  ;;  %2035 = vmatprep.mubr.msk.bf16.mxu1 %vm2384_vm0, %v2383_v0 }
 0x870   :  { %2033 = vmatprep.subr.bf16.mxu1 %v2383_v0 }
 0x873   :  { %2034 = vmatpush3.bf16.msra.mxu1 %v2526_v37 }
 0x874   :  { %2063 = vmatprep.subr.bf16.mxu1 %v2383_v0 }
 0x875   :  { %v741_v10 = vpop.permute.xlu1 %740 }
 0x87a   :  { %2036 = vmatmul.mubr.msk.bf16.vlgmr.msra.gmra.mrb[12].mxu1 %vm90_vm1, %v741_v10 }
 0x87b   :  { %2064 = vmatpush3.bf16.msra.mxu1 %v2463_v2  ;;  %2067 = vmatprep.mubr.msk.bf16.mxu1 %vm2384_vm0, %v2383_v0 }
 0x87c   :  { %2065 = vmatprep.subr.bf16.mxu1 %v2383_v0 }
 0x87f   :  { %2066 = vmatpush3.bf16.msra.mxu1 %v2473_v4 }
 0x880   :  { %2071 = vmatprep.subr.bf16.mxu1 %v2383_v0 }
 0x939   :  { %v661_v11 = vpop.f32.mrb[8].mxu1 }
 0x93a   :  { %v668_v12 = vrot.slane %v661_v11, 2  ;;  %v2021_v13 = vpop.f32.mrb[9].mxu1 }
 0x93b   :  { %v664_v14 = vpop.f32.mrb[10].mxu1 }
 0x93c   :  { %v670_v16 = vadd.f32 %v668_v12, %v2495_v9  ;;  %v2022_v17 = vpop.f32.mrb[11].mxu1 }
 0x93e   :  { %2257 = vtanh.f32 %v670_v16  ;;  %v1842_v26 = vmul.f32 -1.442695, %v670_v16 }
 0x948   :  { %v2258_v18 = vpop.eup %2257 }
 0x949   :  { %683 = vrot.lane.b32.xlu0 %v2258_v18, %s2381_s19 }
 0x94d   :  { %v779_v20 = vpop.f32.mrb[12].mxu1 }
 0x94e   :  { %v2161_v21 = vadd.f32 %v2550_v44, %v779_v20  ;;  %v2037_v22 = vpop.f32.mrb[13].mxu1 }
 0x94f   :  { %v782_v23 = vpop.f32.mrb[14].mxu1 }
 0x950   :  { %2259 = vtanh.f32 %v2161_v21  ;;  %v2038_v24 = vpop.f32.mrb[15].mxu1  ;;  %v1845_v9 = vmul.f32 -1.442695, %v2161_v21 }
 0x951   :  { %2261 = vpow2.f32 %v1842_v26 }
 0x95a   :  { %v2260_v25 = vpop.eup %2259 }
 0x95b   :  { %795 = vrot.lane.b32.xlu1 %v2260_v25, %s2381_s19  ;;  %v2262_v27 = vpop.eup %2261 }
 0x95c   :  { %v674_v28 = vadd.f32 1.0, %v2262_v27 }
 0x95e   :  { %2263 = vrcp.f32 %v674_v28 }
 0x95f   :  { %2265 = vpow2.f32 %v1845_v9 }
 0x968   :  { %v2264_v31 = vpop.eup %2263 }
 0x969   :  { %v2266_v33 = vpop.eup %2265  ;;  %v681_v42 = vmul.f32 %v2264_v31, %v679_v41 }
 0x96a   :  { %v789_v36 = vadd.f32 1.0, %v2266_v33 }
 0x96c   :  { %2267 = vrcp.f32 %v789_v36 }
 0x976   :  { %v2268_v38 = vpop.eup %2267 }
 0x977   :  { %v793_v47 = vmul.f32 %v2268_v38, %v2605_v60  ;;  %v1709_v60 = vsel %vm1708_vm2, %v2567_v19, %v1691_v55 }
 0x9bb   :  { %v684_v32 = vpop.permute.xlu0 %683 }
 0x9bc   :  { %v686_v34 = vmul.f32 %v2264_v31, %v684_v32 }
 0x9be   :  { %688 = vrot.lane.b32.xlu0 %v686_v34, %s2386_s2 }
 0x9cd   :  { %v796_v39 = vpop.permute.xlu1 %795 }
 0x9ce   :  { %v798_v40 = vmul.f32 %v2268_v38, %v796_v39 }
 0x9d0   :  { %800 = vrot.lane.b32.xlu1 %v798_v40, %s2386_s2 }
 0xa30   :  { %v689_v43 = vpop.permute.xlu0 %688 }
 0xa31   :  { %v2643_v45 = vadd.f32 %v689_v43, %v681_v42 }
 0xa33   :  { %2269 = vtanh.f32 %v2643_v45  ;;  %v867_v9 = vrot.slane %v2643_v45, 6 }
 0xa3d   :  { %v2270_v46 = vpop.eup %2269 }
 0xa3e   :  { %694 = vrot.lane.b32.xlu0 %v2270_v46, %s2381_s19 }
 0xa42   :  { %v801_v48 = vpop.permute.xlu1 %800 }
 0xa43   :  { %v2648_v49 = vadd.f32 %v801_v48, %v793_v47 }
 0xa45   :  { %2271 = vtanh.f32 %v2648_v49 }
 0xa4f   :  { %v2272_v50 = vpop.eup %2271 }
 0xa50   :  { %806 = vrot.lane.b32.xlu1 %v2272_v50, %s2381_s19 }
 0xab0   :  { %v695_v51 = vpop.permute.xlu0 %694 }
 0xab1   :  { %v697_v52 = vmul.f32 %v2264_v31, %v695_v51 }
 0xab3   :  { %v810_v53 = vpack.c.bf16 %v697_v52, %v697_v52 }
 0xab5   :  { %v812_v54 = vrot.slane %v810_v53, 3 }
 0xab7   :  { %813 = vrot.lane.b32.xlu0 %v812_v54, %s2386_s2 }
 0xac2   :  { %v807_v56 = vpop.permute.xlu1 %806 }
 0xac3   :  { %v809_v57 = vmul.f32 %v2268_v38, %v807_v56 }
 0xac5   :  { %v926_v58 = vpack.c.bf16 %v809_v57, %v809_v57  ;;  %v1694_v59 = vrot.slane %v809_v57, 4 }
 0xac7   :  { %v2657_v61 = vsel %vm1710_vm3, %v1709_v60, %v1694_v59  ;;  %928 = vrot.lane.b32.xlu1 %v926_v58, %s2386_s2 }
 0xb29   :  { %v814_v62 = vpop.permute.xlu0 %813 }
 0xb2a   :  { %2044 = vmatmul.mubr.msk.bf16.vlgmr.msra.gmra.mrb[16].mxu0 %vm90_vm1, %v814_v62 }
 0xb2b   :  { %2048 = vmatpush3.bf16.msra.mxu0 %v2508_v29  ;;  %2051 = vmatprep.mubr.msk.bf16.mxu0 %vm2384_vm0, %v2383_v0 }
 0xb2c   :  { %2049 = vmatprep.subr.bf16.mxu0 %v2383_v0 }
 0xb2f   :  { %2050 = vmatpush3.bf16.msra.mxu0 %v2514_v30 }
 0xb30   :  { %2055 = vmatprep.subr.bf16.mxu0 %v2383_v0 }
 0xb32   :  { %2052 = vmatmul.mubr.msk.bf16.vlgmr.msra.gmra.mrb[20].mxu0 %vm90_vm1, %v814_v62 }
 0xb33   :  { %2056 = vmatpush3.bf16.msra.mxu0 %v2521_v35  ;;  %2059 = vmatprep.mubr.msk.bf16.mxu0 %vm2384_vm0, %v2383_v0 }
 0xb34   :  { %2057 = vmatprep.subr.bf16.mxu0 %v2383_v0 }
 0xb37   :  { %2058 = vmatpush3.bf16.msra.mxu0 %v2526_v37 }
 0xb38   :  { %2087 = vmatprep.subr.bf16.mxu0 %v2383_v0 }
 0xb39   :  { %v929_v19 = vpop.permute.xlu1 %928 }
 0xb3e   :  { %2060 = vmatmul.mubr.msk.bf16.vlgmr.msra.gmra.mrb[20].mxu0 %vm90_vm1, %v929_v19 }
 0xb3f   :  { %2088 = vmatpush3.bf16.msra.mxu0 %v2463_v2  ;;  %2091 = vmatprep.mubr.msk.bf16.mxu0 %vm2384_vm0, %v2383_v0 }
 0xb40   :  { %2089 = vmatprep.subr.bf16.mxu0 %v2383_v0 }
 0xb43   :  { %2090 = vmatpush3.bf16.msra.mxu0 %v2473_v4 }
 0xb44   :  { %2095 = vmatprep.subr.bf16.mxu0 %v2383_v0 }
 0xbfd   :  { %v852_v63 = vpop.f32.mrb[16].mxu0 }
 0xbfe   :  { %v858_v1 = vadd.f32 %v852_v63, %v2498_v15  ;;  %v2045_v3 = vpop.f32.mrb[17].mxu0 }
 0xbff   :  { %v855_v5 = vpop.f32.mrb[18].mxu0 }
 0xc00   :  { %2273 = vtanh.f32 %v858_v1  ;;  %v2046_v6 = vpop.f32.mrb[19].mxu0  ;;  %v1847_v16 = vmul.f32 -1.442695, %v858_v1 }
 0xc0a   :  { %v2274_v7 = vpop.eup %2273 }
 0xc0b   :  { %871 = vrot.lane.b32.xlu0 %v2274_v7, %s2381_s19 }
 0xc11   :  { %v967_v8 = vpop.f32.mrb[20].mxu0 }
 0xc12   :  { %v2162_v10 = vadd.f32 %v2550_v44, %v967_v8  ;;  %v2061_v11 = vpop.f32.mrb[21].mxu0 }
 0xc13   :  { %v970_v12 = vpop.f32.mrb[22].mxu0 }
 0xc14   :  { %2275 = vtanh.f32 %v2162_v10  ;;  %v2062_v13 = vpop.f32.mrb[23].mxu0  ;;  %v1850_v20 = vmul.f32 -1.442695, %v2162_v10 }
 0xc15   :  { %2277 = vpow2.f32 %v1847_v16 }
 0xc1e   :  { %v2276_v14 = vpop.eup %2275 }
 0xc1f   :  { %983 = vrot.lane.b32.xlu1 %v2276_v14, %s2381_s19  ;;  %v2278_v17 = vpop.eup %2277 }
 0xc20   :  { %v862_v18 = vadd.f32 1.0, %v2278_v17 }
 0xc22   :  { %2279 = vrcp.f32 %v862_v18 }
 0xc23   :  { %2281 = vpow2.f32 %v1850_v20 }
 0xc2c   :  { %v2280_v21 = vpop.eup %2279 }
 0xc2d   :  { %v2282_v24 = vpop.eup %2281  ;;  %v869_v31 = vmul.f32 %v2280_v21, %v867_v9 }
 0xc2e   :  { %v977_v25 = vadd.f32 1.0, %v2282_v24 }
 0xc30   :  { %2283 = vrcp.f32 %v977_v25 }
 0xc3a   :  { %v2284_v26 = vpop.eup %2283 }
 0xc3b   :  { %v981_v36 = vmul.f32 %v2284_v26, %v2648_v49 }
 0xc7d   :  { %v872_v22 = vpop.permute.xlu0 %871 }
 0xc7e   :  { %v874_v23 = vmul.f32 %v2280_v21, %v872_v22 }
 0xc80   :  { %876 = vrot.lane.b32.xlu0 %v874_v23, %s2386_s2 }
 0xc91   :  { %v984_v27 = vpop.permute.xlu1 %983 }
 0xc92   :  { %v986_v28 = vmul.f32 %v2284_v26, %v984_v27 }
 0xc94   :  { %988 = vrot.lane.b32.xlu1 %v986_v28, %s2386_s2 }
 0xcf2   :  { %v877_v32 = vpop.permute.xlu0 %876 }
 0xcf3   :  { %v2688_v33 = vadd.f32 %v877_v32, %v869_v31 }
 0xcf5   :  { %2285 = vtanh.f32 %v2688_v33  ;;  %v1057_v14 = vrot.slane %v2688_v33, 6 }
 0xcff   :  { %v2286_v34 = vpop.eup %2285 }
 0xd00   :  { %882 = vrot.lane.b32.xlu0 %v2286_v34, %s2381_s19 }
 0xd06   :  { %v989_v38 = vpop.permute.xlu1 %988 }
 0xd07   :  { %v2693_v39 = vadd.f32 %v989_v38, %v981_v36 }
 0xd09   :  { %2287 = vtanh.f32 %v2693_v39 }
 0xd13   :  { %v2288_v40 = vpop.eup %2287 }
 0xd14   :  { %994 = vrot.lane.b32.xlu1 %v2288_v40, %s2381_s19 }
 0xd72   :  { %v883_v41 = vpop.permute.xlu0 %882 }
 0xd73   :  { %v885_v42 = vmul.f32 %v2280_v21, %v883_v41 }
 0xd75   :  { %v998_v43 = vpack.c.bf16 %v885_v42, %v885_v42 }
 0xd77   :  { %1000 = vrot.lane.b32.xlu0 %v998_v43, %s2386_s2 }
 0xd86   :  { %v995_v45 = vpop.permute.xlu1 %994 }
 0xd87   :  { %v997_v46 = vmul.f32 %v2284_v26, %v995_v45 }
 0xd89   :  { %v1116_v47 = vpack.c.bf16 %v997_v46, %v997_v46  ;;  %v1697_v48 = vrot.slane %v997_v46, 2 }
 0xd8b   :  { %1118 = vrot.lane.b32.xlu1 %v1116_v47, %s2386_s2  ;;  %v2701_v49 = vsel %vm1712_vm4, %v2657_v61, %v1697_v48 }
 0xde9   :  { %v1001_v50 = vpop.permute.xlu0 %1000 }
 0xdea   :  { %2068 = vmatmul.mubr.msk.bf16.vlgmr.msra.gmra.mrb[16].mxu1 %vm90_vm1, %v1001_v50 }
 0xdeb   :  { %2072 = vmatpush3.bf16.msra.mxu1 %v2508_v29  ;;  %2075 = vmatprep.mubr.msk.bf16.mxu1 %vm2384_vm0, %v2383_v0 }
 0xdec   :  { %2073 = vmatprep.subr.bf16.mxu1 %v2383_v0 }
 0xdef   :  { %2074 = vmatpush3.bf16.msra.mxu1 %v2514_v30 }
 0xdf0   :  { %2079 = vmatprep.subr.bf16.mxu1 %v2383_v0 }
 0xdf2   :  { %2076 = vmatmul.mubr.msk.bf16.vlgmr.msra.gmra.mrb[20].mxu1 %vm90_vm1, %v1001_v50 }
 0xdf3   :  { %2080 = vmatpush3.bf16.msra.mxu1 %v2521_v35  ;;  %2083 = vmatprep.mubr.msk.bf16.mxu1 %vm2384_vm0, %v2383_v0 }
 0xdf4   :  { %2081 = vmatprep.subr.bf16.mxu1 %v2383_v0 }
 0xdf7   :  { %2082 = vmatpush3.bf16.msra.mxu1 %v2526_v37 }
 0xdf8   :  { %2111 = vmatprep.subr.bf16.mxu1 %v2383_v0 }
 0xdfd   :  { %v1119_v51 = vpop.permute.xlu1 %1118 }
 0xdfe   :  { %2084 = vmatmul.mubr.msk.bf16.vlgmr.msra.gmra.mrb[20].mxu1 %vm90_vm1, %v1119_v51 }
 0xdff   :  { %2112 = vmatpush3.bf16.msra.mxu1 %v2463_v2  ;;  %2115 = vmatprep.mubr.msk.bf16.mxu1 %vm2384_vm0, %v2383_v0 }
 0xe00   :  { %2113 = vmatprep.subr.bf16.mxu1 %v2383_v0 }
 0xe03   :  { %2114 = vmatpush3.bf16.msra.mxu1 %v2473_v4 }
 0xe04   :  { %2119 = vmatprep.subr.bf16.mxu1 %v2383_v0 }
 0xebd   :  { %v1039_v52 = vpop.f32.mrb[16].mxu1 }
 0xebe   :  { %v1046_v53 = vrot.slane %v1039_v52, 6  ;;  %v2069_v54 = vpop.f32.mrb[17].mxu1 }
 0xebf   :  { %v1042_v55 = vpop.f32.mrb[18].mxu1 }
 0xec0   :  { %v1048_v56 = vadd.f32 %v1046_v53, %v2498_v15  ;;  %v2070_v57 = vpop.f32.mrb[19].mxu1 }
 0xec2   :  { %2289 = vtanh.f32 %v1048_v56  ;;  %v1852_v19 = vmul.f32 -1.442695, %v1048_v56 }
 0xecc   :  { %v2290_v58 = vpop.eup %2289 }
 0xecd   :  { %1061 = vrot.lane.b32.xlu0 %v2290_v58, %s2381_s19 }
 0xed1   :  { %v1157_v2 = vpop.f32.mrb[20].mxu1 }
 0xed2   :  { %v2163_v59 = vadd.f32 %v2550_v44, %v1157_v2  ;;  %v2085_v60 = vpop.f32.mrb[21].mxu1 }
 0xed3   :  { %v1160_v61 = vpop.f32.mrb[22].mxu1 }
 0xed4   :  { %2291 = vtanh.f32 %v2163_v59  ;;  %v2086_v4 = vpop.f32.mrb[23].mxu1  ;;  %v1855_v3 = vmul.f32 -1.442695, %v2163_v59 }
 0xed5   :  { %2293 = vpow2.f32 %v1852_v19 }
 0xede   :  { %v2292_v62 = vpop.eup %2291 }
 0xedf   :  { %1173 = vrot.lane.b32.xlu1 %v2292_v62, %s2381_s19  ;;  %v2294_v63 = vpop.eup %2293 }
 0xee0   :  { %v1052_v1 = vadd.f32 1.0, %v2294_v63 }
 0xee2   :  { %2295 = vrcp.f32 %v1052_v1 }
 0xee3   :  { %2297 = vpow2.f32 %v1855_v3 }
 0xeec   :  { %v2296_v5 = vpop.eup %2295 }
 0xeed   :  { %v2298_v7 = vpop.eup %2297  ;;  %v1059_v16 = vmul.f32 %v2296_v5, %v1057_v14 }
 0xeee   :  { %v1167_v10 = vadd.f32 1.0, %v2298_v7 }
 0xef0   :  { %2299 = vrcp.f32 %v1167_v10 }
 0xefa   :  { %v2300_v11 = vpop.eup %2299 }
 0xefb   :  { %v1171_v21 = vmul.f32 %v2300_v11, %v2693_v39 }
 0xf3f   :  { %v1062_v6 = vpop.permute.xlu0 %1061 }
 0xf40   :  { %v1064_v8 = vmul.f32 %v2296_v5, %v1062_v6 }
 0xf42   :  { %1066 = vrot.lane.b32.xlu0 %v1064_v8, %s2386_s2 }
 0xf51   :  { %v1174_v12 = vpop.permute.xlu1 %1173 }
 0xf52   :  { %v1176_v13 = vmul.f32 %v2300_v11, %v1174_v12 }
 0xf54   :  { %1178 = vrot.lane.b32.xlu1 %v1176_v13, %s2386_s2 }
 0xfb4   :  { %v1067_v17 = vpop.permute.xlu0 %1066 }
 0xfb5   :  { %v2731_v18 = vadd.f32 %v1067_v17, %v1059_v16 }
 0xfb7   :  { %2301 = vtanh.f32 %v2731_v18  ;;  %v1248_v62 = vrot.slane %v2731_v18, 6 }
 0xfc1   :  { %v2302_v20 = vpop.eup %2301 }
 0xfc2   :  { %1072 = vrot.lane.b32.xlu0 %v2302_v20, %s2381_s19 }
 0xfc6   :  { %v1179_v22 = vpop.permute.xlu1 %1178 }
 0xfc7   :  { %v2736_v23 = vadd.f32 %v1179_v22, %v1171_v21 }
 0xfc9   :  { %2303 = vtanh.f32 %v2736_v23 }
 0xfd3   :  { %v2304_v24 = vpop.eup %2303 }
 0xfd4   :  { %1184 = vrot.lane.b32.xlu1 %v2304_v24, %s2381_s19 }
0x1034   :  { %v1073_v25 = vpop.permute.xlu0 %1072 }
0x1035   :  { %v1075_v26 = vmul.f32 %v2296_v5, %v1073_v25 }
0x1037   :  { %v1188_v27 = vpack.c.bf16 %v1075_v26, %v1075_v26 }
0x1039   :  { %v1190_v28 = vrot.slane %v1188_v27, 1 }
0x103b   :  { %1191 = vrot.lane.b32.xlu0 %v1190_v28, %s2386_s2 }
0x1046   :  { %v1185_v9 = vpop.permute.xlu1 %1184 }
0x1047   :  { %v2741_v31 = vmul.f32 %v2300_v11, %v1185_v9 }
0x1049   :  { %v1307_v32 = vpack.c.bf16 %v2741_v31, %v2741_v31 }
0x104b   :  { %1309 = vrot.lane.b32.xlu1 %v1307_v32, %s2386_s2 }
0x10ad   :  { %v1192_v33 = vpop.permute.xlu0 %1191 }
0x10ae   :  { %2092 = vmatmul.mubr.msk.bf16.vlgmr.msra.gmra.mrb[24].mxu0 %vm90_vm1, %v1192_v33 }
0x10af   :  { %2096 = vmatpush3.bf16.msra.mxu0 %v2508_v29  ;;  %2099 = vmatprep.mubr.msk.bf16.mxu0 %vm2384_vm0, %v2383_v0 }
0x10b0   :  { %2097 = vmatprep.subr.bf16.mxu0 %v2383_v0 }
0x10b3   :  { %2098 = vmatpush3.bf16.msra.mxu0 %v2514_v30 }
0x10b4   :  { %2103 = vmatprep.subr.bf16.mxu0 %v2383_v0 }
0x10b6   :  { %2100 = vmatmul.mubr.msk.bf16.vlgmr.msra.gmra.mrb[28].mxu0 %vm90_vm1, %v1192_v33 }
0x10b7   :  { %2104 = vmatpush3.bf16.msra.mxu0 %v2521_v35  ;;  %2107 = vmatprep.mubr.msk.bf16.mxu0 %vm2384_vm0, %v2383_v0 }
0x10b8   :  { %2105 = vmatprep.subr.bf16.mxu0 %v2383_v0 }
0x10bb   :  { %2106 = vmatpush3.bf16.msra.mxu0 %v2526_v37 }
0x10bc   :  { %2135 = vmatprep.subr.bf16.mxu0 %v2383_v0 }
0x10bd   :  { %v1310_v34 = vpop.permute.xlu1 %1309 }
0x10c2   :  { %2108 = vmatmul.mubr.msk.bf16.vlgmr.msra.gmra.mrb[28].mxu0 %vm90_vm1, %v1310_v34 }
0x10c3   :  { %2136 = vmatpush3.bf16.msra.mxu0 %v2508_v29  ;;  %2139 = vmatprep.mubr.msk.bf16.mxu0 %vm2384_vm0, %v2383_v0 }
0x10c4   :  { %2137 = vmatprep.subr.bf16.mxu0 %v2383_v0 }
0x10c7   :  { %2138 = vmatpush3.bf16.msra.mxu0 %v2514_v30 }
0x10c8   :  { %2143 = vmatprep.subr.bf16.mxu0 %v2383_v0 }
0x1181   :  { %v1230_v36 = vpop.f32.mrb[24].mxu0 }
0x1182   :  { %v1237_v38 = vrot.slane %v1230_v36, 4  ;;  %v2093_v39 = vpop.f32.mrb[25].mxu0 }
0x1183   :  { %v1233_v40 = vpop.f32.mrb[26].mxu0 }
0x1184   :  { %v1239_v41 = vadd.f32 %v1237_v38, %v2498_v15  ;;  %v2094_v42 = vpop.f32.mrb[27].mxu0 }
0x1186   :  { %2305 = vtanh.f32 %v1239_v41  ;;  %v1857_v52 = vmul.f32 -1.442695, %v1239_v41 }
0x1190   :  { %v2306_v43 = vpop.eup %2305 }
0x1191   :  { %1252 = vrot.lane.b32.xlu0 %v2306_v43, %s2381_s19 }
0x1195   :  { %v1348_v45 = vpop.f32.mrb[28].mxu0 }
0x1196   :  { %v2164_v46 = vadd.f32 %v2550_v44, %v1348_v45  ;;  %v2109_v47 = vpop.f32.mrb[29].mxu0 }
0x1197   :  { %v1351_v48 = vpop.f32.mrb[30].mxu0 }
0x1198   :  { %2307 = vtanh.f32 %v2164_v46  ;;  %v2110_v50 = vpop.f32.mrb[31].mxu0  ;;  %v1860_v55 = vmul.f32 -1.442695, %v2164_v46 }
0x1199   :  { %2309 = vpow2.f32 %v1857_v52 }
0x11a2   :  { %v2308_v51 = vpop.eup %2307 }
0x11a3   :  { %1364 = vrot.lane.b32.xlu1 %v2308_v51, %s2381_s19  ;;  %v2310_v53 = vpop.eup %2309 }
0x11a4   :  { %v1243_v54 = vadd.f32 1.0, %v2310_v53 }
0x11a6   :  { %2311 = vrcp.f32 %v1243_v54 }
0x11a7   :  { %2313 = vpow2.f32 %v1860_v55 }
0x11b0   :  { %v2312_v56 = vpop.eup %2311 }
0x11b1   :  { %v2314_v58 = vpop.eup %2313  ;;  %v1250_v19 = vmul.f32 %v2312_v56, %v1248_v62 }
0x11b2   :  { %v1358_v59 = vadd.f32 1.0, %v2314_v58 }
0x11b4   :  { %2315 = vrcp.f32 %v1358_v59 }
0x11be   :  { %v2316_v60 = vpop.eup %2315 }
0x11bf   :  { %v1362_v5 = vmul.f32 %v2316_v60, %v2736_v23 }
0x1203   :  { %v1253_v57 = vpop.permute.xlu0 %1252 }
0x1204   :  { %v1255_v2 = vmul.f32 %v2312_v56, %v1253_v57 }
0x1206   :  { %1257 = vrot.lane.b32.xlu0 %v1255_v2, %s2386_s2 }
0x1215   :  { %v1365_v61 = vpop.permute.xlu1 %1364 }
0x1216   :  { %v1367_v4 = vmul.f32 %v2316_v60, %v1365_v61 }
0x1218   :  { %1369 = vrot.lane.b32.xlu1 %v1367_v4, %s2386_s2 }
0x1278   :  { %v1258_v63 = vpop.permute.xlu0 %1257 }
0x1279   :  { %v2774_v1 = vadd.f32 %v1258_v63, %v1250_v19 }
0x127b   :  { %2317 = vtanh.f32 %v2774_v1  ;;  %v1439_v45 = vrot.slane %v2774_v1, 6  ;;  %v2353_v1 = vld [vmem:[#allocation2] sm:$0xff]  }
0x1285   :  { %v2318_v3 = vpop.eup %2317 }
0x1286   :  { %1263 = vrot.lane.b32.xlu0 %v2318_v3, %s2381_s19  ;;  %v2354_v3 = vld [vmem:[#allocation2 + $0x8] sm:$0xff]  }
0x128a   :  { %v1370_v6 = vpop.permute.xlu1 %1369 }
0x128b   :  { %v2779_v7 = vadd.f32 %v1370_v6, %v1362_v5  ;;  %v2355_v6 = vld [vmem:[%s2865_s6] ss:$0 sm:$0xff] }
0x128d   :  { %2319 = vtanh.f32 %v2779_v7 }
0x1297   :  { %v2320_v8 = vpop.eup %2319 }
0x1298   :  { %1375 = vrot.lane.b32.xlu1 %v2320_v8, %s2381_s19 }
0x12f8   :  { %v1264_v10 = vpop.permute.xlu0 %1263 }
0x12f9   :  { %v1266_v11 = vmul.f32 %v2312_v56, %v1264_v10 }
0x12fb   :  { %v1379_v12 = vpack.c.bf16 %v1266_v11, %v1266_v11 }
0x12fd   :  { %v1381_v13 = vrot.slane %v1379_v12, 2 }
0x12ff   :  { %1382 = vrot.lane.b32.xlu0 %v1381_v13, %s2386_s2 }
0x130a   :  { %v1376_v14 = vpop.permute.xlu1 %1375 }
0x130b   :  { %v2784_v16 = vmul.f32 %v2316_v60, %v1376_v14 }
0x130d   :  { %v1498_v17 = vpack.c.bf16 %v2784_v16, %v2784_v16  ;;  %v1700_v2 = vrot.slane %v2784_v16, 6 }
0x130f   :  { %1500 = vrot.lane.b32.xlu1 %v1498_v17, %s2386_s2  ;;  %v1714_v62 = vsel %vm1708_vm2, %v2741_v31, %v1700_v2 }
0x1371   :  { %v1383_v18 = vpop.permute.xlu0 %1382 }
0x1372   :  { %2116 = vmatmul.mubr.msk.bf16.vlgmr.msra.gmra.mrb[24].mxu1 %vm90_vm1, %v1383_v18 }
0x1373   :  { %2120 = vmatpush3.bf16.msra.mxu1 %v2508_v29  ;;  %2123 = vmatprep.mubr.msk.bf16.mxu1 %vm2384_vm0, %v2383_v0 }
0x1374   :  { %2121 = vmatprep.subr.bf16.mxu1 %v2383_v0 }
0x1377   :  { %2122 = vmatpush3.bf16.msra.mxu1 %v2514_v30 }
0x1378   :  { %2127 = vmatprep.subr.bf16.mxu1 %v2383_v0 }
0x137a   :  { %2124 = vmatmul.mubr.msk.bf16.vlgmr.msra.gmra.mrb[28].mxu1 %vm90_vm1, %v1383_v18 }
0x137b   :  { %2128 = vmatpush3.bf16.msra.mxu1 %v2521_v35  ;;  %2131 = vmatprep.mubr.msk.bf16.mxu1 %vm2384_vm0, %v2383_v0 }
0x137c   :  { %2129 = vmatprep.subr.bf16.mxu1 %v2383_v0 }
0x137f   :  { %2130 = vmatpush3.bf16.msra.mxu1 %v2526_v37 }
0x1380   :  { %2151 = vmatprep.subr.bf16.mxu1 %v2383_v0 }
0x1381   :  { %v1501_v29 = vpop.permute.xlu1 %1500 }
0x1386   :  { %2132 = vmatmul.mubr.msk.bf16.vlgmr.msra.gmra.mrb[28].mxu1 %vm90_vm1, %v1501_v29 }
0x1387   :  { %2155 = vmatprep.mubr.msk.bf16.mxu1 %vm2384_vm0, %v2383_v0 }
0x1445   :  { %v1421_v30 = vpop.f32.mrb[24].mxu1 }
0x1446   :  { %v1428_v20 = vrot.slane %v1421_v30, 2  ;;  %v2117_v21 = vpop.f32.mrb[25].mxu1 }
0x1447   :  { %v1424_v22 = vpop.f32.mrb[26].mxu1 }
0x1448   :  { %v1430_v35 = vadd.f32 %v1428_v20, %v2498_v15  ;;  %v2118_v23 = vpop.f32.mrb[27].mxu1  ;;  %v2215_v22 = vld [vmem:[%s2866_s7] sm:$0xff]  }
0x1449   :  { %2152 = vmatpush3.bf16.msra.mxu1 %v2215_v22 }
0x144a   :  { %2321 = vtanh.f32 %v1430_v35  ;;  %v1862_v32 = vmul.f32 -1.442695, %v1430_v35  ;;  %v2216_v35 = vld [vmem:[%s2866_s7 + $0x8] sm:$0xff]   ;;  %2153 = vmatprep.subr.bf16.mxu1 %v2383_v0 }
0x144d   :  { %2154 = vmatpush3.bf16.msra.mxu1 %v2216_v35 }
0x1454   :  { %v2322_v24 = vpop.eup %2321 }
0x1455   :  { %1443 = vrot.lane.b32.xlu0 %v2322_v24, %s2381_s19 }
0x1459   :  { %v1539_v37 = vpop.f32.mrb[28].mxu1 }
0x145a   :  { %v2165_v25 = vadd.f32 %v2550_v44, %v1539_v37  ;;  %v2133_v26 = vpop.f32.mrb[29].mxu1 }
0x145b   :  { %v1542_v27 = vpop.f32.mrb[30].mxu1 }
0x145c   :  { %2323 = vtanh.f32 %v2165_v25  ;;  %v2134_v28 = vpop.f32.mrb[31].mxu1  ;;  %v1865_v15 = vmul.f32 -1.442695, %v2165_v25 }
0x145d   :  { %2325 = vpow2.f32 %v1862_v32 }
0x1466   :  { %v2324_v9 = vpop.eup %2323 }
0x1467   :  { %1555 = vrot.lane.b32.xlu1 %v2324_v9, %s2381_s19  ;;  %v2326_v33 = vpop.eup %2325 }
0x1468   :  { %v1434_v34 = vadd.f32 1.0, %v2326_v33 }
0x146a   :  { %2327 = vrcp.f32 %v1434_v34 }
0x146b   :  { %2329 = vpow2.f32 %v1865_v15 }
0x1474   :  { %v2328_v36 = vpop.eup %2327 }
0x1475   :  { %v2330_v39 = vpop.eup %2329  ;;  %v1441_v46 = vmul.f32 %v2328_v36, %v1439_v45 }
0x1476   :  { %v1549_v44 = vadd.f32 1.0, %v2330_v39 }
0x1478   :  { %2331 = vrcp.f32 %v1549_v44 }
0x1482   :  { %v2332_v41 = vpop.eup %2331 }
0x1483   :  { %v1553_v51 = vmul.f32 %v2332_v41, %v2779_v7 }
0x14c7   :  { %v1444_v38 = vpop.permute.xlu0 %1443 }
0x14c8   :  { %v1446_v40 = vmul.f32 %v2328_v36, %v1444_v38 }
0x14ca   :  { %1448 = vrot.lane.b32.xlu0 %v1446_v40, %s2386_s2 }
0x14d9   :  { %v1556_v42 = vpop.permute.xlu1 %1555 }
0x14da   :  { %v1558_v43 = vmul.f32 %v2332_v41, %v1556_v42 }
0x14dc   :  { %1560 = vrot.lane.b32.xlu1 %v1558_v43, %s2386_s2 }
0x153c   :  { %v1449_v47 = vpop.permute.xlu0 %1448 }
0x153d   :  { %v1451_v48 = vadd.f32 %v1449_v47, %v1441_v46 }
0x153f   :  { %2333 = vtanh.f32 %v1451_v48 }
0x1549   :  { %v2334_v50 = vpop.eup %2333 }
0x154a   :  { %1454 = vrot.lane.b32.xlu0 %v2334_v50, %s2381_s19 }
0x154e   :  { %v1561_v52 = vpop.permute.xlu1 %1560 }
0x154f   :  { %v1563_v53 = vadd.f32 %v1561_v52, %v1553_v51 }
0x1551   :  { %2335 = vtanh.f32 %v1563_v53 }
0x155b   :  { %v2336_v54 = vpop.eup %2335 }
0x155c   :  { %1566 = vrot.lane.b32.xlu1 %v2336_v54, %s2381_s19 }
0x15bc   :  { %v1455_v55 = vpop.permute.xlu0 %1454 }
0x15bd   :  { %v1457_v56 = vmul.f32 %v2328_v36, %v1455_v55 }
0x15bf   :  { %v1570_v57 = vpack.c.bf16 %v1457_v56, %v1457_v56 }
0x15c1   :  { %v1572_v58 = vrot.slane %v1570_v57, 3 }
0x15c3   :  { %1573 = vrot.lane.b32.xlu0 %v1572_v58, %s2386_s2 }
0x15ce   :  { %v1567_v59 = vpop.permute.xlu1 %1566 }
0x15cf   :  { %v1569_v60 = vmul.f32 %v2332_v41, %v1567_v59 }
0x15d1   :  { %v1618_v61 = vpack.c.bf16 %v1569_v60, %v1569_v60  ;;  %v1703_v4 = vrot.slane %v1569_v60, 4 }
0x15d3   :  { %v1715_v19 = vsel %vm1710_vm3, %v1714_v62, %v1703_v4  ;;  %1620 = vrot.lane.b32.xlu1 %v1618_v61, %s2386_s2 }
0x1635   :  { %v1574_v63 = vpop.permute.xlu0 %1573 }
0x1636   :  { %2140 = vmatmul.mubr.msk.bf16.vlgmr.msra.gmra.mrb[32].mxu0 %vm90_vm1, %v1574_v63 }
0x1637   :  { %2144 = vmatpush3.bf16.msra.mxu0 %v2353_v1  ;;  %2147 = vmatprep.mubr.msk.bf16.mxu0 %vm2384_vm0, %v2383_v0 }
0x1638   :  { %2145 = vmatprep.subr.bf16.mxu0 %v2383_v0  ;;  %v1869_v0 = vld [vmem:[%s2867_s8] ss:$0 sm:$0xff] }
0x163b   :  { %2146 = vmatpush3.bf16.msra.mxu0 %v2354_v3 }
0x1645   :  { %v1621_v5 = vpop.permute.xlu1 %1620 }
0x1646   :  { %2148 = vmatmul.mubr.msk.bf16.vlgmr.msra.gmra.mrb[32].mxu0 %vm90_vm1, %v1621_v5 }
0x1719   :  { %v1659_v31 = vpop.f32.mrb[32].mxu0 }
0x171a   :  { %v2166_v7 = vadd.f32 %v2355_v6, %v1659_v31  ;;  %v2149_v8 = vpop.f32.mrb[33].mxu0 }
0x171b   :  { %v1662_v10 = vpop.f32.mrb[34].mxu0 }
0x171c   :  { %2337 = vtanh.f32 %v2166_v7  ;;  %v2150_v11 = vpop.f32.mrb[35].mxu0  ;;  %v1868_v13 = vmul.f32 -1.442695, %v2166_v7 }
0x171e   :  { %2339 = vpow2.f32 %v1868_v13 }
0x1726   :  { %v2338_v12 = vpop.eup %2337 }
0x1727   :  { %1675 = vrot.lane.b32.xlu0 %v2338_v12, %s2381_s19 }
0x1728   :  { %v2340_v14 = vpop.eup %2339 }
0x1729   :  { %v1669_v16 = vadd.f32 1.0, %v2340_v14 }
0x172b   :  { %2341 = vrcp.f32 %v1669_v16 }
0x1735   :  { %v2342_v17 = vpop.eup %2341 }
0x1736   :  { %v1673_v30 = vmul.f32 %v2342_v17, %v1563_v53 }
0x1799   :  { %v1676_v18 = vpop.permute.xlu0 %1675 }
0x179a   :  { %v1678_v29 = vmul.f32 %v2342_v17, %v1676_v18 }
0x179c   :  { %1680 = vrot.lane.b32.xlu1 %v1678_v29, %s2386_s2 }
0x180e   :  { %v1681_v20 = vpop.permute.xlu1 %1680 }
0x180f   :  { %v1683_v21 = vadd.f32 %v1681_v20, %v1673_v30 }
0x1811   :  { %2343 = vtanh.f32 %v1683_v21 }
0x181b   :  { %v2344_v23 = vpop.eup %2343 }
0x181c   :  { %1686 = vrot.lane.b32.xlu0 %v2344_v23, %s2381_s19 }
0x188e   :  { %v1687_v24 = vpop.permute.xlu0 %1686 }
0x188f   :  { %v1689_v37 = vmul.f32 %v2342_v17, %v1687_v24 }
0x1891   :  { %v1706_v25 = vrot.slane %v1689_v37, 2 }
0x1893   :  { %v1716_v26 = vsel %vm1712_vm4, %v1715_v19, %v1706_v25 }
0x1894   :  { %v1717_v27 = vpack.c.bf16 %v1716_v26, %v2701_v49 }
0x1896   :  { %1730 = vrot.lane.b32.xlu1 %v1717_v27, %s2386_s2 }
0x1908   :  { %v1731_v28 = vpop.permute.xlu1 %1730 }
0x1909   :  { %2156 = vmatmul.mubr.msk.bf16.vlgmr.msra.gmra.mrb[32].mxu1 %vm90_vm1, %v1731_v28 }
0x19dc   :  { %v1781_v9 = vpop.f32.mrb[32].mxu1 }
0x19dd   :  { %v1782_v32 = vadd.f32 %v1869_v0, %v1781_v9  ;;  %v2157_v33 = vpop.f32.mrb[33].mxu1 }
0x19de   :  { %v1784_v34 = vpop.f32.mrb[34].mxu1 }
0x19df   :  { %v1785_v15 = vadd.f32 %v1869_v0, %v1784_v34  ;;  %v2158_v36 = vpop.f32.mrb[35].mxu1  ;;  %v1788_v38 = vsel %vm90_vm1, %v1782_v32, -inf }
0x19e0   :  { %1789 = vmax.xlane.f32.xlu0 %v1788_v38 }
0x19e1   :  { %v1791_v49 = vsel %vm90_vm1, %v1785_v15, -inf }
0x19e2   :  { %1792 = vmax.xlane.f32.xlu1 %v1791_v49 }
0x1a6d   :  { %v1790_v39 = vpop.xlane.xlu0 %1789 }
0x1a6e   :  { %v1794_v40 = vsub.f32 %v1782_v32, %v1790_v39 }
0x1a6f   :  { %v1793_v44 = vpop.xlane.xlu1 %1792 }
0x1a70   :  { %v1796_v41 = vmul.f32 1.442695, %v1794_v40  ;;  %v1795_v42 = vsub.f32 %v1785_v15, %v1793_v44 }
0x1a72   :  { %2345 = vpow2.f32 %v1796_v41  ;;  %v1798_v43 = vmul.f32 1.442695, %v1795_v42 }
0x1a74   :  { %2347 = vpow2.f32 %v1798_v43 }
0x1a7c   :  { %v2346_v45 = vpop.eup %2345 }
0x1a7d   :  { %v1800_v46 = vsel %vm90_vm1, %v2346_v45, 0.0 }
0x1a7e   :  { %v2348_v47 = vpop.eup %2347  ;;  %1801 = vadd.xlane.f32.xlu0 %v1800_v46 }
0x1a7f   :  { %v1803_v48 = vsel %vm90_vm1, %v2348_v47, 0.0 }
0x1a82   :  { %1804 = vadd.xlane.f32.xlu0 %v1803_v48 }
0x1b0b   :  { %v1802_v50 = vpop.xlane.xlu0 %1801 }
0x1b0c   :  { %2349 = vlog2.f32 %v1802_v50 }
0x1b0f   :  { %v1805_v51 = vpop.xlane.xlu0 %1804 }
0x1b10   :  { %2351 = vlog2.f32 %v1805_v51 }
0x1b16   :  { %v2350_v52 = vpop.eup %2349 }
0x1b17   :  { %v1807_v53 = vmul.f32 0.6931472, %v2350_v52 }
0x1b19   :  { %v1810_v54 = vsub.f32 %v1794_v40, %v1807_v53 }
0x1b1a   :  { %v2352_v55 = vpop.eup %2351 }
0x1b1b   :  { %1812 = vst.msk [vmem:[%s2868_s9] sm:$0xff] %vm90_vm1, %v1810_v54  ;;  %v1809_v56 = vmul.f32 0.6931472, %v2352_v55 }
0x1b1d   :  { %v1811_v57 = vsub.f32 %v1795_v42, %v1809_v56 }
0x1b1f   :  { %1813 = vst.msk [vmem:[%s2868_s9 + $0x8] sm:$0xff] %vm90_vm1, %v1811_v57 }
0x1b20   :  { %1818 = vsyncpa [#allocation3], 1 }

</bundles_post_ra>
